<compile_context>
chip_gen: v5e
topology: v5e:2x2
jax: 0.10.0
libtpu: 0.0.40
codegen_flags: <defaults>
</compile_context>

<pallas_src>
import functools
import math

import jax
import jax.numpy as jnp
from jax.experimental import pallas as pl
from jax.experimental.pallas import tpu as pltpu


def _solve_ternary_threshold():
    """t such that 1.5*tanh(t) - 0.5*tanh(3t) == 0.5 (monotone -> bisection)."""
    lo, hi = 0.0, 2.0
    for _ in range(100):
        mid = 0.5 * (lo + hi)
        if 1.5 * math.tanh(mid) - 0.5 * math.tanh(3.0 * mid) < 0.5:
            lo = mid
        else:
            hi = mid
    return 0.5 * (lo + hi)


# ternary_tanh(z) = round(1.5*tanh(z) + 0.5*tanh(-3z)). The inner expression is
# strictly monotone, bounded in (-1,1), and crosses +-0.5 exactly at z == +-t
# below (ties at the measure-zero points z == +-t round to 0 under
# round-half-to-even, matching the compare-based mapping here). Thresholding
# therefore reproduces the {-1,0,1} output while removing 2 of 6 EUP tanh
# evaluations per latent element.
_TT_THRESHOLD = _solve_ternary_threshold()   # ~0.79468


def _round_up(n, m=128):
    return ((n + m - 1) // m) * m


def _decoder_tanh_in_bf16():
    """bf16 tanh uses the EUP bf16 path on v6e/v7x; v5e and older have no
    bf16 EUP path, so keep f32 there."""
    try:
        kind = jax.devices()[0].device_kind.lower()
    except Exception:
        return False
    return any(tag in kind for tag in ("v6", "v7", "7x"))


def qbn_kernel(x_ref,
               w0, w1, w2, w3, w4, w5,   # bf16 weights, (in, out), hidden dims padded to 128
               b_ref,                    # (8,128) f32, one bias row per layer
               o_ref,
               *, dec_tanh_bf16):
    biases = b_ref[...]                  # single (8,128) load; rows sliced below

    def dense(h, w_ref, row, width):
        # bf16 operands on the MXU, f32 accumulation, f32 bias add.
        acc = jnp.dot(h.astype(jnp.bfloat16), w_ref[...],
                      preferred_element_type=jnp.float32)
        return acc + biases[row:row + 1, :width]

    x = x_ref[...]                       # bf16 (tile_b, dim) straight from HBM

    # ----- encoder (tanh kept in f32: keeps the ternary decision bit-stable) -----
    h = jnp.tanh(dense(x, w0, 0, 128))
    h = jnp.tanh(dense(h, w1, 1, 128))
    z = dense(h, w2, 2, 128)

    # ternary_tanh via two VPU compares (see _TT_THRESHOLD note above).
    z = jnp.where(z > _TT_THRESHOLD, 1.0,
                  jnp.where(z < -_TT_THRESHOLD, -1.0, 0.0))

    # ----- decoder -----
    if dec_tanh_bf16:
        # v6e/v7x: bf16 EUP tanh; the next matmul consumes bf16 anyway.
        act = lambda v: jnp.tanh(v.astype(jnp.bfloat16))
    else:
        # v5e (no bf16 EUP) / fallback: f32 tanh.
        act = jnp.tanh
    h = act(dense(z, w3, 3, 128))
    h = act(dense(h, w4, 4, 128))
    y = dense(h, w5, 5, o_ref.shape[1])

    o_ref[...] = y.astype(o_ref.dtype)


def prepare_qbn_params(params):
    """One-time weight preparation -- call at init, NOT per forward.

    params: list of 6 (W_t, b) with W_t shaped (in, out), b shaped (1, out)
    or (out,), all float32.

    Returns (weights, bias_block):
      * hidden in/out dims zero-padded to 128 (lane-dense activations); the
        network input dim (K of layer 0) and output dim (N of the last layer)
        stay unpadded -- K=32 is fine on the MXU, and a 32-lane output block
        avoids a 4x padded write plus a follow-up slice kernel.
      * weights cast to bf16 (MXU-native).
      * biases packed into one (8,128) f32 block (one sublane row per layer).
    Zero padding contributes nothing (tanh(0)=0 feeds zero weight rows), so
    results are unchanged.
    """
    n = len(params)
    assert n <= 8, "bias packing assumes <= 8 layers"
    weights = []
    bias_block = jnp.zeros((8, 128), jnp.float32)
    for li, (w, b) in enumerate(params):
        i, o = w.shape
        assert o <= 128, "bias packing assumes layer widths <= 128"
        ip = i if li == 0 else _round_up(i)
        op = o if li == n - 1 else _round_up(o)
        wp = jnp.zeros((ip, op), jnp.bfloat16).at[:i, :o].set(w.astype(jnp.bfloat16))
        weights.append(wp)
        bias_block = bias_block.at[li, :o].set(jnp.ravel(b).astype(jnp.float32))
    return weights, bias_block


def qbn_forward(x, weights, bias_block, *, tile_b=512):
    """x: (B, dim) float. weights/bias_block: cached output of prepare_qbn_params.

    tile_b: rows per grid step. 512 fills the MXU M side and amortizes the
    ~0.35us/step pipeline overhead; for batch<=512 this collapses to a single
    grid step (ideal on the single-TensorCore v5e/v6e). On v7x, pick tile_b so
    the "parallel" grid has an even number (>=2) of steps to occupy both
    TensorCores, and budget VMEM against its 64 MiB (vs 128 MiB) if raising
    tile_b for very large batches.
    """
    B, dim = x.shape
    assert weights[0].shape[0] == dim
    n_out = weights[-1].shape[1]

    x = x.astype(jnp.bfloat16)        # halve input DMA; the matmul is bf16 anyway

    tile_b = min(tile_b, B)
    pad_b = (-B) % tile_b             # remainder handling: pad rows, slice below
    if pad_b:
        x = jnp.concatenate([x, jnp.zeros((pad_b, dim), x.dtype)], axis=0)
    bp = B + pad_b
    steps = bp // tile_b

    # x / out stay at their true 32-lane width: input loads are cheap (vld is
    # not the bottleneck) and a (tile_b, 32) output block beats a padded
    # 128-lane write plus a separate XLA slice kernel.
    x_spec = pl.BlockSpec((tile_b, dim), lambda i: (i, 0))
    out_spec = pl.BlockSpec((tile_b, n_out), lambda i: (i, 0))

    # Constant index maps: each weight/bias block is DMA'd once and stays
    # VMEM-resident across grid steps (Pallas skips the re-fetch when the
    # block index never changes). Total padded weight footprint ~160 KB bf16.
    w_specs = [pl.BlockSpec(w.shape, lambda i: (0, 0)) for w in weights]
    b_spec = pl.BlockSpec(bias_block.shape, lambda i: (0, 0))

    flops = 2 * bp * sum(int(w.shape[0]) * int(w.shape[1]) for w in weights)
    bytes_accessed = (x.size * x.dtype.itemsize
                      + bp * n_out * 4
                      + sum(int(w.size) * 2 for w in weights)
                      + bias_block.size * 4)
    cost = pl.CostEstimate(flops=flops,
                           transcendentals=4 * bp * 128,
                           bytes_accessed=bytes_accessed)

    kernel = functools.partial(qbn_kernel, dec_tanh_bf16=_decoder_tanh_in_bf16())

    out = pl.pallas_call(
        kernel,
        out_shape=jax.ShapeDtypeStruct((bp, n_out), jnp.float32),
        grid_spec=pltpu.PrefetchScalarGridSpec(
            num_scalar_prefetch=0,
            grid=(steps,),
            in_specs=[x_spec] + w_specs + [b_spec],
            out_specs=out_spec,
        ),
        compiler_params=pltpu.CompilerParams(
            dimension_semantics=("parallel",)),
        cost_estimate=cost,
    )(x, *weights, bias_block)

    return out if pad_b == 0 else out[:B]


def init_linear(key, in_f, out_f):
    """Deterministic init matching PyTorch nn.Linear default (uniform +-1/sqrt(in)).
    Returns weight already transposed to (in, out) and bias as (1, out)."""
    kw, kb = jax.random.split(key)
    bound = 1.0 / math.sqrt(in_f)
    w_t = jax.random.uniform(kw, (in_f, out_f), jnp.float32, -bound, bound)
    b = jax.random.uniform(kb, (1, out_f), jnp.float32, -bound, bound)
    return w_t, b


def make_qbn_params(key, dim, layers=(128, 64, 16)):
    keys = jax.random.split(key, 6)
    # encoder: dim->128, 128->64, 64->16
    enc = [init_linear(keys[0], dim, layers[0]),
           init_linear(keys[1], layers[0], layers[1]),
           init_linear(keys[2], layers[1], layers[2])]
    # decoder (after the [::-1] reversal in the module): 16->64, 64->128, 128->dim
    dec = [init_linear(keys[3], layers[2], layers[1]),
           init_linear(keys[4], layers[1], layers[0]),
           init_linear(keys[5], layers[0], dim)]
    return enc + dec


def qbn_reference(x, params, *, dec_tanh_bf16=False):
    """Pure-JAX reference mirroring the kernel's precision choices
    (bf16 matmul inputs, f32 accumulation, threshold ternarization,
    optional bf16 decoder tanh)."""
    def lin(h, p):
        return jnp.dot(h.astype(jnp.bfloat16), p[0].astype(jnp.bfloat16),
                       preferred_element_type=jnp.float32) + p[1].reshape(1, -1)
    x = x.astype(jnp.bfloat16)
    h = jnp.tanh(lin(x, params[0]))
    h = jnp.tanh(lin(h, params[1]))
    z = lin(h, params[2])
    z = jnp.where(z > _TT_THRESHOLD, 1.0,
                  jnp.where(z < -_TT_THRESHOLD, -1.0, 0.0))
    act = (lambda v: jnp.tanh(v.astype(jnp.bfloat16))) if dec_tanh_bf16 else jnp.tanh
    h = act(lin(z, params[3]))
    h = act(lin(h, params[4]))
    return lin(h, params[5])


if __name__ == "__main__":
    key = jax.random.PRNGKey(0)
    k_x, k_p = jax.random.split(key)

    batch, dim = 256, 32
    layers = (128, 64, 16)

    x = jax.random.normal(k_x, (batch, dim), jnp.float32)
    params = make_qbn_params(k_p, dim, layers)

    # One-time weight prep (pad + bf16 cast + bias packing), hoisted out of
    # the per-forward hot path.
    weights, bias_block = prepare_qbn_params(params)
    weights = [jax.device_put(w) for w in weights]
    bias_block = jax.device_put(bias_block)

    out = qbn_forward(x, weights, bias_block)     # batch<=512 -> single grid step
    out = jax.block_until_ready(out)

    dec_bf16 = _decoder_tanh_in_bf16()
    ref = qbn_reference(x, params, dec_tanh_bf16=dec_bf16)
    # With bf16 decoder tanh enabled (v6e/v7x), XLA's and Mosaic's bf16 tanh
    # may differ by 1 ulp, so the tolerance is loosened accordingly; the
    # ternary latent itself is computed identically (f32 encoder path).
    tol = 3e-2 if dec_bf16 else 2e-3
    assert out.shape == (batch, dim)
    assert jnp.allclose(out, ref, atol=tol, rtol=tol), "mismatch vs reference"

    print("KERNEL_OK")
</pallas_src>

<mosaic_0001>
module attributes {stable_mosaic.version = 11 : i64} {
  func.func @qbn_kernel(%arg0: i32, %arg1: memref<256x32xbf16, #tpu.memory_space<vmem>>, %arg2: memref<32x128xbf16, #tpu.memory_space<vmem>>, %arg3: memref<128x128xbf16, #tpu.memory_space<vmem>>, %arg4: memref<128x128xbf16, #tpu.memory_space<vmem>>, %arg5: memref<128x128xbf16, #tpu.memory_space<vmem>>, %arg6: memref<128x128xbf16, #tpu.memory_space<vmem>>, %arg7: memref<128x32xbf16, #tpu.memory_space<vmem>>, %arg8: memref<8x128xf32, #tpu.memory_space<vmem>>, %arg9: memref<256x32xf32, #tpu.memory_space<vmem>>) attributes {dimension_semantics = [#tpu.dimension_semantics<parallel>], iteration_bounds = array<i64: 1>, scalar_prefetch = 0 : i64, scratch_operands = 0 : i64, tpu.core_type = #tpu.core_type<tc>, window_params = [{transform_indices = @transform_0, window_bounds = array<i64: 256, 32>}, {pipeline_mode = #tpu.pipeline_mode<synchronous>, transform_indices = @transform_1, window_bounds = array<i64: 32, 128>}, {pipeline_mode = #tpu.pipeline_mode<synchronous>, transform_indices = @transform_2, window_bounds = array<i64: 128, 128>}, {pipeline_mode = #tpu.pipeline_mode<synchronous>, transform_indices = @transform_3, window_bounds = array<i64: 128, 128>}, {pipeline_mode = #tpu.pipeline_mode<synchronous>, transform_indices = @transform_4, window_bounds = array<i64: 128, 128>}, {pipeline_mode = #tpu.pipeline_mode<synchronous>, transform_indices = @transform_5, window_bounds = array<i64: 128, 128>}, {pipeline_mode = #tpu.pipeline_mode<synchronous>, transform_indices = @transform_6, window_bounds = array<i64: 128, 32>}, {pipeline_mode = #tpu.pipeline_mode<synchronous>, transform_indices = @transform_7, window_bounds = array<i64: 8, 128>}, {transform_indices = @transform_8, window_bounds = array<i64: 256, 32>}]} {
    %c0 = arith.constant 0 : index
    %c0_0 = arith.constant 0 : index
    %0 = vector.load %arg8[%c0, %c0_0] : memref<8x128xf32, #tpu.memory_space<vmem>>, vector<8x128xf32>
    %c0_1 = arith.constant 0 : index
    %c0_2 = arith.constant 0 : index
    %1 = vector.load %arg1[%c0_1, %c0_2] : memref<256x32xbf16, #tpu.memory_space<vmem>>, vector<256x32xbf16>
    %c0_3 = arith.constant 0 : index
    %c0_4 = arith.constant 0 : index
    %2 = vector.load %arg2[%c0_3, %c0_4] : memref<32x128xbf16, #tpu.memory_space<vmem>>, vector<32x128xbf16>
    %cst = arith.constant dense<0.000000e+00> : vector<256x128xf32>
    %3 = tpu.matmul %1, %2, %cst {dimension_numbers = #tpu.dot_dimension_numbers<[1], [0], [0], [1], [0, 0, 1, 1], [], []>} : vector<256x32xbf16>, vector<32x128xbf16>, vector<256x128xf32> -> vector<256x128xf32>
    %4 = vector.extract_strided_slice %0 {offsets = [0, 0], sizes = [1, 128], strides = [1, 1]} : vector<8x128xf32> to vector<1x128xf32>
    %5 = vector.broadcast %4 : vector<1x128xf32> to vector<256x128xf32>
    %6 = arith.addf %3, %5 : vector<256x128xf32>
    %7 = math.tanh %6 : vector<256x128xf32>
    %8 = arith.truncf %7 : vector<256x128xf32> to vector<256x128xbf16>
    %c0_5 = arith.constant 0 : index
    %c0_6 = arith.constant 0 : index
    %9 = vector.load %arg3[%c0_5, %c0_6] : memref<128x128xbf16, #tpu.memory_space<vmem>>, vector<128x128xbf16>
    %cst_7 = arith.constant dense<0.000000e+00> : vector<256x128xf32>
    %10 = tpu.matmul %8, %9, %cst_7 {dimension_numbers = #tpu.dot_dimension_numbers<[1], [0], [0], [1], [0, 0, 1, 1], [], []>} : vector<256x128xbf16>, vector<128x128xbf16>, vector<256x128xf32> -> vector<256x128xf32>
    %11 = vector.extract_strided_slice %0 {offsets = [1, 0], sizes = [1, 128], strides = [1, 1]} : vector<8x128xf32> to vector<1x128xf32>
    %12 = vector.broadcast %11 : vector<1x128xf32> to vector<256x128xf32>
    %13 = arith.addf %10, %12 : vector<256x128xf32>
    %14 = math.tanh %13 : vector<256x128xf32>
    %15 = arith.truncf %14 : vector<256x128xf32> to vector<256x128xbf16>
    %c0_8 = arith.constant 0 : index
    %c0_9 = arith.constant 0 : index
    %16 = vector.load %arg4[%c0_8, %c0_9] : memref<128x128xbf16, #tpu.memory_space<vmem>>, vector<128x128xbf16>
    %cst_10 = arith.constant dense<0.000000e+00> : vector<256x128xf32>
    %17 = tpu.matmul %15, %16, %cst_10 {dimension_numbers = #tpu.dot_dimension_numbers<[1], [0], [0], [1], [0, 0, 1, 1], [], []>} : vector<256x128xbf16>, vector<128x128xbf16>, vector<256x128xf32> -> vector<256x128xf32>
    %18 = vector.extract_strided_slice %0 {offsets = [2, 0], sizes = [1, 128], strides = [1, 1]} : vector<8x128xf32> to vector<1x128xf32>
    %19 = vector.broadcast %18 : vector<1x128xf32> to vector<256x128xf32>
    %20 = arith.addf %17, %19 : vector<256x128xf32>
    %cst_11 = arith.constant 0.794675946 : f32
    %21 = vector.broadcast %cst_11 : f32 to vector<256x128xf32>
    %22 = arith.cmpf ogt, %20, %21 : vector<256x128xf32>
    %cst_12 = arith.constant -0.794675946 : f32
    %23 = vector.broadcast %cst_12 : f32 to vector<256x128xf32>
    %24 = arith.cmpf olt, %20, %23 : vector<256x128xf32>
    %cst_13 = arith.constant -1.000000e+00 : f32
    %cst_14 = arith.constant 0.000000e+00 : f32
    %25 = vector.broadcast %cst_13 : f32 to vector<256x128xf32>
    %26 = vector.broadcast %cst_14 : f32 to vector<256x128xf32>
    %27 = arith.select %24, %25, %26 : vector<256x128xi1>, vector<256x128xf32>
    %cst_15 = arith.constant 1.000000e+00 : f32
    %28 = vector.broadcast %cst_15 : f32 to vector<256x128xf32>
    %29 = arith.select %22, %28, %27 : vector<256x128xi1>, vector<256x128xf32>
    %30 = arith.truncf %29 : vector<256x128xf32> to vector<256x128xbf16>
    %c0_16 = arith.constant 0 : index
    %c0_17 = arith.constant 0 : index
    %31 = vector.load %arg5[%c0_16, %c0_17] : memref<128x128xbf16, #tpu.memory_space<vmem>>, vector<128x128xbf16>
    %cst_18 = arith.constant dense<0.000000e+00> : vector<256x128xf32>
    %32 = tpu.matmul %30, %31, %cst_18 {dimension_numbers = #tpu.dot_dimension_numbers<[1], [0], [0], [1], [0, 0, 1, 1], [], []>} : vector<256x128xbf16>, vector<128x128xbf16>, vector<256x128xf32> -> vector<256x128xf32>
    %33 = vector.extract_strided_slice %0 {offsets = [3, 0], sizes = [1, 128], strides = [1, 1]} : vector<8x128xf32> to vector<1x128xf32>
    %34 = vector.broadcast %33 : vector<1x128xf32> to vector<256x128xf32>
    %35 = arith.addf %32, %34 : vector<256x128xf32>
    %36 = math.tanh %35 : vector<256x128xf32>
    %37 = arith.truncf %36 : vector<256x128xf32> to vector<256x128xbf16>
    %c0_19 = arith.constant 0 : index
    %c0_20 = arith.constant 0 : index
    %38 = vector.load %arg6[%c0_19, %c0_20] : memref<128x128xbf16, #tpu.memory_space<vmem>>, vector<128x128xbf16>
    %cst_21 = arith.constant dense<0.000000e+00> : vector<256x128xf32>
    %39 = tpu.matmul %37, %38, %cst_21 {dimension_numbers = #tpu.dot_dimension_numbers<[1], [0], [0], [1], [0, 0, 1, 1], [], []>} : vector<256x128xbf16>, vector<128x128xbf16>, vector<256x128xf32> -> vector<256x128xf32>
    %40 = vector.extract_strided_slice %0 {offsets = [4, 0], sizes = [1, 128], strides = [1, 1]} : vector<8x128xf32> to vector<1x128xf32>
    %41 = vector.broadcast %40 : vector<1x128xf32> to vector<256x128xf32>
    %42 = arith.addf %39, %41 : vector<256x128xf32>
    %43 = math.tanh %42 : vector<256x128xf32>
    %44 = arith.truncf %43 : vector<256x128xf32> to vector<256x128xbf16>
    %c0_22 = arith.constant 0 : index
    %c0_23 = arith.constant 0 : index
    %45 = vector.load %arg7[%c0_22, %c0_23] : memref<128x32xbf16, #tpu.memory_space<vmem>>, vector<128x32xbf16>
    %cst_24 = arith.constant dense<0.000000e+00> : vector<256x32xf32>
    %46 = tpu.matmul %44, %45, %cst_24 {dimension_numbers = #tpu.dot_dimension_numbers<[1], [0], [0], [1], [0, 0, 1, 1], [], []>} : vector<256x128xbf16>, vector<128x32xbf16>, vector<256x32xf32> -> vector<256x32xf32>
    %47 = vector.extract_strided_slice %0 {offsets = [5, 0], sizes = [1, 32], strides = [1, 1]} : vector<8x128xf32> to vector<1x32xf32>
    %48 = vector.broadcast %47 : vector<1x32xf32> to vector<256x32xf32>
    %49 = arith.addf %46, %48 : vector<256x32xf32>
    %c0_25 = arith.constant 0 : index
    %c0_26 = arith.constant 0 : index
    %50 = vector.load %arg9[%c0_25, %c0_26] : memref<256x32xf32, #tpu.memory_space<vmem>>, vector<256x32xf32>
    tpu.vector_store %arg9[%c0_25, %c0_26], %49 {strides = array<i32>} : memref<256x32xf32, #tpu.memory_space<vmem>>, vector<256x32xf32>,
    return
  }
  func.func @transform_0(%arg0: i32) -> (i32, i32) {
    %c0_i32 = arith.constant 0 : i32
    %c0_i32_0 = arith.constant 0 : i32
    return %arg0, %c0_i32 : i32, i32
  }
  func.func @transform_1(%arg0: i32) -> (i32, i32) {
    %c0_i32 = arith.constant 0 : i32
    %c0_i32_0 = arith.constant 0 : i32
    %c0_i32_1 = arith.constant 0 : i32
    return %c0_i32, %c0_i32_0 : i32, i32
  }
  func.func @transform_2(%arg0: i32) -> (i32, i32) {
    %c0_i32 = arith.constant 0 : i32
    %c0_i32_0 = arith.constant 0 : i32
    %c0_i32_1 = arith.constant 0 : i32
    return %c0_i32, %c0_i32_0 : i32, i32
  }
  func.func @transform_3(%arg0: i32) -> (i32, i32) {
    %c0_i32 = arith.constant 0 : i32
    %c0_i32_0 = arith.constant 0 : i32
    %c0_i32_1 = arith.constant 0 : i32
    return %c0_i32, %c0_i32_0 : i32, i32
  }
  func.func @transform_4(%arg0: i32) -> (i32, i32) {
    %c0_i32 = arith.constant 0 : i32
    %c0_i32_0 = arith.constant 0 : i32
    %c0_i32_1 = arith.constant 0 : i32
    return %c0_i32, %c0_i32_0 : i32, i32
  }
  func.func @transform_5(%arg0: i32) -> (i32, i32) {
    %c0_i32 = arith.constant 0 : i32
    %c0_i32_0 = arith.constant 0 : i32
    %c0_i32_1 = arith.constant 0 : i32
    return %c0_i32, %c0_i32_0 : i32, i32
  }
  func.func @transform_6(%arg0: i32) -> (i32, i32) {
    %c0_i32 = arith.constant 0 : i32
    %c0_i32_0 = arith.constant 0 : i32
    %c0_i32_1 = arith.constant 0 : i32
    return %c0_i32, %c0_i32_0 : i32, i32
  }
  func.func @transform_7(%arg0: i32) -> (i32, i32) {
    %c0_i32 = arith.constant 0 : i32
    %c0_i32_0 = arith.constant 0 : i32
    %c0_i32_1 = arith.constant 0 : i32
    return %c0_i32, %c0_i32_0 : i32, i32
  }
  func.func @transform_8(%arg0: i32) -> (i32, i32) {
    %c0_i32 = arith.constant 0 : i32
    %c0_i32_0 = arith.constant 0 : i32
    return %arg0, %c0_i32 : i32, i32
  }
}

</mosaic_0001>

<bundles_post_ra>
// kernel: tpu_custom_call.1
= control target key start
LH: loop header
LB: loop body
LE: loop exit
PB: predicated region body
PF: predicated region fallthrough
CT: control target
= control target key end

     0   :  { %13 = vsyncpa [#allocation3], 0  ;;  %s2060_s30 = smov [#allocation2]   ;;  %s2061_s10 = smov 64   ;;  %s2730_s0 = inlined_call_operand.vmem [shape: bf16[256,32], index: 0, kind: input, shape index: {}]   ;;  %s2731_s1 = inlined_call_operand.vmem [shape: bf16[32,128], index: 1, kind: input, shape index: {}]   ;;  %s2732_s2 = inlined_call_operand.vmem [shape: bf16[128,128], index: 2, kind: input, shape index: {}]   ;;  %s2733_s3 = inlined_call_operand.vmem [shape: bf16[128,128], index: 3, kind: input, shape index: {}]   ;;  %s2734_s4 = inlined_call_operand.vmem [shape: bf16[128,128], index: 4, kind: input, shape index: {}]   ;;  %s2735_s5 = inlined_call_operand.hbm [shape: bf16[128,128], index: 5, kind: input, shape index: {}]   ;;  %s2736_s6 = inlined_call_operand.vmem [shape: bf16[128,32], index: 6, kind: input, shape index: {}]   ;;  %s2737_s7 = inlined_call_operand.vmem [shape: f32[8,128], index: 7, kind: input, shape index: {}]   ;;  %s2738_s8 = inlined_call_operand.vmem [shape: f32[256,32], index: 8, kind: output, shape index: {}]  }
   0x1   :  { %s28_s29 = sshll.u32 %s2735_s5, 4  ;;  %s30_s9 = sshll.u32 %s2060_s30, 4  ;;  %s29_s29 = int_to_ptr.hbm [resolvable:$true] %s28_s29  ;;  %s31_s9 = int_to_ptr.vmem [resolvable:$true] %s30_s9 }
   0x2   :  { %s2062_s11 = smov 4  }
   0x3   :  { %36 = dma.hbm_to_vmem [thread:$0]  %s29_s29, 1024, %s31_s9, [#allocation3], %s2061_s10, %s2061_s10, %s2062_s11  }
   0x4   :  { %2058 = dma.done.wait [#allocation3], 1024  }
   0x5   :  { %2059 = vsyncadd [#allocation3], 4294966272  ;;  %v1722_v0 = vld [vmem:[%s2731_s1 + $0x8] sm:$0xff]  ;;  %v1721_v1 = vld [vmem:[%s2731_s1] sm:$0xff]  ;;  %vm176_vm0 = vcmask 261120  }
   0x6   :  { %231 = vmatpush.bf16.msra.mxu0 %v1722_v0  ;;  %1763 = vmatpush.bf16.msra.mxu3 %v1722_v0  ;;  %v1705_v2 = vld [vmem:[%s2730_s0] sm:$0xff]  ;;  %v1706_v3 = vld [vmem:[%s2730_s0 + $0x8] sm:$0xff]  ;;  %v1707_v4 = vld [vmem:[%s2730_s0 + $0x10] sm:$0xff] }
   0x7   :  { %v1708_v5 = vld [vmem:[%s2730_s0 + $0x18] sm:$0xff]  ;;  %v1709_v6 = vld [vmem:[%s2730_s0 + $0x20] sm:$0xff]  ;;  %v1710_v7 = vld [vmem:[%s2730_s0 + $0x28] sm:$0xff] }
   0x8   :  { %v1730_v8 = vld [vmem:[%s2732_s2 + $0x38] sm:$0xff]  ;;  %v1729_v9 = vld [vmem:[%s2732_s2 + $0x30] sm:$0xff]  ;;  %v1728_v10 = vld [vmem:[%s2732_s2 + $0x28] sm:$0xff] }
   0x9   :  { %427 = vmatpush.bf16.msra.mxu1 %v1730_v8  ;;  %1765 = vmatpush.bf16.msra.mxu2 %v1730_v8  ;;  %v1711_v11 = vld [vmem:[%s2730_s0 + $0x30] sm:$0xff]  ;;  %v1727_v12 = vld [vmem:[%s2732_s2 + $0x20] sm:$0xff]  ;;  %v1714_v13 = vld [vmem:[%s2730_s0 + $0x48] sm:$0xff] }
   0xa   :  { %232 = vmatpush.bf16.msra.mxu0 %v1721_v1  ;;  %1764 = vmatpush.bf16.msra.mxu3 %v1721_v1  ;;  %v1726_v14 = vld [vmem:[%s2732_s2 + $0x18] sm:$0xff]  ;;  %v1725_v15 = vld [vmem:[%s2732_s2 + $0x10] sm:$0xff]  ;;  %v1724_v16 = vld [vmem:[%s2732_s2 + $0x8] sm:$0xff] }
   0xb   :  { %v1712_v17 = vld [vmem:[%s2730_s0 + $0x38] sm:$0xff]  ;;  %v1723_v18 = vld [vmem:[%s2732_s2] sm:$0xff]  ;;  %v1715_v19 = vld [vmem:[%s2730_s0 + $0x50] sm:$0xff] }
   0xc   :  { %v2185_v20 = vld [vmem:[%s2737_s7] sm:$0xff]  ;;  %v1716_v24 = vld [vmem:[%s2730_s0 + $0x58] sm:$0xff]  ;;  %v1718_v40 = vld [vmem:[%s2730_s0 + $0x68] sm:$0xff] }
   0xd   :  { %1529 = vmatmul.msk.bf16.vlgmr.msra.gmra.mxu0 %vm176_vm0, %v1705_v2  ;;  %428 = vmatpush.bf16.msra.mxu1 %v1729_v9  ;;  %v1713_v21 = vld [vmem:[%s2730_s0 + $0x40] sm:$0xff]  ;;  %v2191_v23 = vperm.slane %v2185_v20, 0  ;;  %v1719_v48 = vld [vmem:[%s2730_s0 + $0x70] sm:$0xff]  ;;  %v1720_v56 = vld [vmem:[%s2730_s0 + $0x78] sm:$0xff] }
   0xe   :  { %1766 = vmatpush.bf16.msra.mxu2 %v1729_v9  ;;  %1538 = vmatmul.msk.bf16.vlgmr.msra.gmra.mxu3 %vm176_vm0, %v1714_v13  ;;  %v1717_v32 = vld [vmem:[%s2730_s0 + $0x60] sm:$0xff] }
  0x11   :  { %429 = vmatpush.bf16.msra.mxu1 %v1728_v10 }
  0x12   :  { %1767 = vmatpush.bf16.msra.mxu2 %v1728_v10 }
  0x15   :  { %430 = vmatpush.bf16.msra.mxu1 %v1727_v12 }
  0x16   :  { %1768 = vmatpush.bf16.msra.mxu2 %v1727_v12 }
  0x19   :  { %431 = vmatpush.bf16.msra.mxu1 %v1726_v14 }
  0x1a   :  { %1769 = vmatpush.bf16.msra.mxu2 %v1726_v14 }
  0x1d   :  { %1530 = vmatmul.msk.bf16.gmra.mxu0 %vm176_vm0, %v1706_v3  ;;  %432 = vmatpush.bf16.msra.mxu1 %v1725_v15 }
  0x1e   :  { %1770 = vmatpush.bf16.msra.mxu2 %v1725_v15  ;;  %1539 = vmatmul.msk.bf16.gmra.mxu3 %vm176_vm0, %v1715_v19  ;;  %v1738_v15 = vld [vmem:[%s2733_s3 + $0x38] sm:$0xff] }
  0x21   :  { %433 = vmatpush.bf16.msra.mxu1 %v1724_v16 }
  0x22   :  { %1771 = vmatpush.bf16.msra.mxu2 %v1724_v16 }
  0x25   :  { %434 = vmatpush.bf16.msra.mxu1 %v1723_v18 }
  0x26   :  { %1772 = vmatpush.bf16.msra.mxu2 %v1723_v18 }
  0x2a   :  { %629 = vmatpush.bf16.msrb.mxu2 %v1738_v15 }
  0x2d   :  { %1531 = vmatmul.msk.bf16.gmra.mxu0 %vm176_vm0, %v1707_v4 }
  0x2e   :  { %1540 = vmatmul.msk.bf16.gmra.mxu3 %vm176_vm0, %v1716_v24 }
  0x3d   :  { %1532 = vmatmul.msk.bf16.gmra.mxu0 %vm176_vm0, %v1708_v5 }
  0x3e   :  { %1541 = vmatmul.msk.bf16.gmra.mxu3 %vm176_vm0, %v1717_v32 }
  0x4d   :  { %1533 = vmatmul.msk.bf16.gmra.mxu0 %vm176_vm0, %v1709_v6 }
  0x4e   :  { %1542 = vmatmul.msk.bf16.gmra.mxu3 %vm176_vm0, %v1718_v40 }
  0x5d   :  { %1534 = vmatmul.msk.bf16.gmra.mxu0 %vm176_vm0, %v1710_v7 }
  0x5e   :  { %1543 = vmatmul.msk.bf16.gmra.mxu3 %vm176_vm0, %v1719_v48 }
  0x6d   :  { %1535 = vmatmul.msk.bf16.gmra.mxu0 %vm176_vm0, %v1711_v11 }
  0x6e   :  { %1544 = vmatmul.msk.bf16.gmra.mxu3 %vm176_vm0, %v1720_v56 }
  0x7d   :  { %1536 = vmatmul.msk.bf16.gmra.mxu0 %vm176_vm0, %v1712_v17 }
  0x8a   :  { %v234_v22 = vpop.f32.mrf.mxu0 }
  0x8b   :  { %v235_v25 = vadd.f32 %v234_v22, %v2191_v23 }
  0x8d   :  { %1537 = vmatmul.msk.bf16.gmra.mxu0 %vm176_vm0, %v1713_v21  ;;  %1777 = vtanh.f32 %v235_v25 }
  0x91   :  { %v279_v12 = vpop.f32.mrf.mxu3 }
  0x92   :  { %v236_v26 = vpop.f32.mrf.mxu0 }
  0x93   :  { %v237_v27 = vadd.f32 %v236_v26, %v2191_v23  ;;  %v1778_v28 = vpop.eup %1777 }
  0x95   :  { %1779 = vtanh.f32 %v237_v27  ;;  %v1737_v27 = vld [vmem:[%s2733_s3 + $0x30] sm:$0xff] }
  0x96   :  { %630 = vmatpush.bf16.msrb.mxu2 %v1737_v27 }
  0x99   :  { %v281_v19 = vpop.f32.mrf.mxu3 }
  0x9a   :  { %v239_v29 = vpop.f32.mrf.mxu0 }
  0x9b   :  { %v1780_v30 = vpop.eup %1779  ;;  %v240_v33 = vadd.f32 %v239_v29, %v2191_v23 }
  0x9c   :  { %v346_v31 = vpack.c.bf16 %v1780_v30, %v1778_v28 }
  0x9d   :  { %1781 = vtanh.f32 %v240_v33 }
  0x9e   :  { %435 = vmatmul.bf16.vlgmr.msra.gmra.mxu1 %v346_v31 }
  0xa1   :  { %v284_v26 = vpop.f32.mrf.mxu3 }
  0xa2   :  { %v241_v34 = vpop.f32.mrf.mxu0 }
  0xa3   :  { %v242_v35 = vadd.f32 %v241_v34, %v2191_v23  ;;  %v1782_v36 = vpop.eup %1781 }
  0xa5   :  { %1783 = vtanh.f32 %v242_v35  ;;  %v280_v35 = vadd.f32 %v279_v12, %v2191_v23 }
  0xa9   :  { %v286_v31 = vpop.f32.mrf.mxu3 }
  0xaa   :  { %v244_v37 = vpop.f32.mrf.mxu0 }
  0xab   :  { %v1784_v38 = vpop.eup %1783  ;;  %v245_v41 = vadd.f32 %v244_v37, %v2191_v23  ;;  %v282_v37 = vadd.f32 %v281_v19, %v2191_v23 }
  0xac   :  { %v347_v39 = vpack.c.bf16 %v1784_v38, %v1782_v36  ;;  %v1736_v36 = vld [vmem:[%s2733_s3 + $0x28] sm:$0xff] }
  0xad   :  { %1785 = vtanh.f32 %v245_v41  ;;  %631 = vmatpush.bf16.msrb.mxu2 %v1736_v36 }
  0xae   :  { %440 = vmatmul.bf16.gmra.mxu1 %v347_v39 }
  0xb1   :  { %v289_v38 = vpop.f32.mrf.mxu3 }
  0xb2   :  { %v246_v42 = vpop.f32.mrf.mxu0 }
  0xb3   :  { %v247_v43 = vadd.f32 %v246_v42, %v2191_v23  ;;  %v1786_v44 = vpop.eup %1785 }
  0xb5   :  { %1787 = vtanh.f32 %v247_v43  ;;  %v285_v43 = vadd.f32 %v284_v26, %v2191_v23 }
  0xb9   :  { %v291_v42 = vpop.f32.mrf.mxu3 }
  0xba   :  { %v249_v45 = vpop.f32.mrf.mxu0 }
  0xbb   :  { %v1788_v46 = vpop.eup %1787  ;;  %v250_v49 = vadd.f32 %v249_v45, %v2191_v23  ;;  %v287_v45 = vadd.f32 %v286_v31, %v2191_v23 }
  0xbc   :  { %v348_v47 = vpack.c.bf16 %v1788_v46, %v1786_v44  ;;  %v1735_v44 = vld [vmem:[%s2733_s3 + $0x20] sm:$0xff] }
  0xbd   :  { %1789 = vtanh.f32 %v250_v49  ;;  %632 = vmatpush.bf16.msrb.mxu2 %v1735_v44 }
  0xbe   :  { %445 = vmatmul.bf16.gmra.mxu1 %v348_v47 }
  0xc1   :  { %v294_v46 = vpop.f32.mrf.mxu3 }
  0xc2   :  { %v251_v50 = vpop.f32.mrf.mxu0 }
  0xc3   :  { %v252_v51 = vadd.f32 %v251_v50, %v2191_v23  ;;  %v1790_v52 = vpop.eup %1789  ;;  %v290_v50 = vadd.f32 %v289_v38, %v2191_v23 }
  0xc5   :  { %1791 = vtanh.f32 %v252_v51  ;;  %v1734_v51 = vld [vmem:[%s2733_s3 + $0x18] sm:$0xff] }
  0xc6   :  { %633 = vmatpush.bf16.msrb.mxu2 %v1734_v51 }
  0xca   :  { %v254_v53 = vpop.f32.mrf.mxu0 }
  0xcb   :  { %v1792_v54 = vpop.eup %1791  ;;  %v255_v57 = vadd.f32 %v254_v53, %v2191_v23  ;;  %v296_v53 = vpop.f32.mrf.mxu3 }
  0xcc   :  { %v349_v55 = vpack.c.bf16 %v1792_v54, %v1790_v52  ;;  %v292_v52 = vadd.f32 %v291_v42, %v2191_v23 }
  0xcd   :  { %1793 = vtanh.f32 %v255_v57 }
  0xce   :  { %450 = vmatmul.bf16.gmra.mxu1 %v349_v55 }
  0xd2   :  { %v256_v58 = vpop.f32.mrf.mxu0 }
  0xd3   :  { %v257_v59 = vadd.f32 %v256_v58, %v2191_v23  ;;  %v1794_v60 = vpop.eup %1793  ;;  %v299_v56 = vpop.f32.mrf.mxu3  ;;  %v295_v58 = vadd.f32 %v294_v46, %v2191_v23 }
  0xd5   :  { %1795 = vtanh.f32 %v257_v59  ;;  %v1733_v59 = vld [vmem:[%s2733_s3 + $0x10] sm:$0xff] }
  0xd6   :  { %634 = vmatpush.bf16.msrb.mxu2 %v1733_v59 }
  0xda   :  { %v259_v61 = vpop.f32.mrf.mxu0 }
  0xdb   :  { %v1796_v62 = vpop.eup %1795  ;;  %v260_v0 = vadd.f32 %v259_v61, %v2191_v23  ;;  %v301_v61 = vpop.f32.mrf.mxu3 }
  0xdc   :  { %v350_v63 = vpack.c.bf16 %v1796_v62, %v1794_v60  ;;  %v297_v60 = vadd.f32 %v296_v53, %v2191_v23 }
  0xdd   :  { %1797 = vtanh.f32 %v260_v0 }
  0xde   :  { %455 = vmatmul.bf16.gmra.mxu1 %v350_v63 }
  0xe2   :  { %v261_v1 = vpop.f32.mrf.mxu0 }
  0xe3   :  { %v262_v2 = vadd.f32 %v261_v1, %v2191_v23  ;;  %v1798_v3 = vpop.eup %1797  ;;  %v300_v1 = vadd.f32 %v299_v56, %v2191_v23 }
  0xe5   :  { %1799 = vtanh.f32 %v262_v2  ;;  %v304_v2 = vpop.f32.mrf.mxu3 }
  0xea   :  { %v264_v4 = vpop.f32.mrf.mxu0 }
  0xeb   :  { %v1800_v5 = vpop.eup %1799  ;;  %v265_v7 = vadd.f32 %v264_v4, %v2191_v23  ;;  %v302_v4 = vadd.f32 %v301_v61, %v2191_v23  ;;  %v1744_v61 = vld [vmem:[%s2734_s4 + $0x28] sm:$0xff] }
  0xec   :  { %v351_v6 = vpack.c.bf16 %v1800_v5, %v1798_v3  ;;  %v1732_v3 = vld [vmem:[%s2733_s3 + $0x8] sm:$0xff] }
  0xed   :  { %1801 = vtanh.f32 %v265_v7  ;;  %635 = vmatpush.bf16.msrb.mxu2 %v1732_v3  ;;  %v306_v7 = vpop.f32.mrf.mxu3 }
  0xee   :  { %460 = vmatmul.bf16.gmra.mxu1 %v351_v6  ;;  %v307_v12 = vadd.f32 %v306_v7, %v2191_v23 }
  0xf2   :  { %v266_v8 = vpop.f32.mrf.mxu0 }
  0xf3   :  { %v267_v9 = vadd.f32 %v266_v8, %v2191_v23  ;;  %v1802_v10 = vpop.eup %1801 }
  0xf5   :  { %1803 = vtanh.f32 %v267_v9 }
  0xfa   :  { %v269_v11 = vpop.f32.mrf.mxu0 }
  0xfb   :  { %v1804_v13 = vpop.eup %1803  ;;  %v270_v16 = vadd.f32 %v269_v11, %v2191_v23  ;;  %v1731_v11 = vld [vmem:[%s2733_s3] sm:$0xff] }
  0xfc   :  { %v352_v14 = vpack.c.bf16 %v1804_v13, %v1802_v10  ;;  %v305_v10 = vadd.f32 %v304_v2, %v2191_v23  ;;  %636 = vmatpush.bf16.msrb.mxu2 %v1731_v11 }
  0xfd   :  { %1805 = vtanh.f32 %v270_v16 }
  0xfe   :  { %465 = vmatmul.bf16.gmra.mxu1 %v352_v14  ;;  %v309_v14 = vpop.f32.mrf.mxu3 }
 0x102   :  { %v271_v17 = vpop.f32.mrf.mxu0 }
 0x103   :  { %v272_v18 = vadd.f32 %v271_v17, %v2191_v23  ;;  %v1806_v21 = vpop.eup %1805 }
 0x105   :  { %1807 = vtanh.f32 %v272_v18 }
 0x106   :  { %v311_v18 = vpop.f32.mrf.mxu3 }
 0x10a   :  { %v274_v22 = vpop.f32.mrf.mxu0 }
 0x10b   :  { %v1808_v24 = vpop.eup %1807  ;;  %v275_v28 = vadd.f32 %v274_v22, %v2191_v23  ;;  %v312_v22 = vadd.f32 %v311_v18, %v2191_v23 }
 0x10c   :  { %v353_v25 = vpack.c.bf16 %v1808_v24, %v1806_v21  ;;  %v310_v21 = vadd.f32 %v309_v14, %v2191_v23 }
 0x10d   :  { %1809 = vtanh.f32 %v275_v28  ;;  %v2271_v28 = vperm.slane %v2185_v20, 1 }
 0x10e   :  { %470 = vmatmul.bf16.gmra.mxu1 %v353_v25 }
 0x112   :  { %v276_v29 = vpop.f32.mrf.mxu0 }
 0x113   :  { %v277_v30 = vadd.f32 %v276_v29, %v2191_v23  ;;  %v1810_v32 = vpop.eup %1809 }
 0x115   :  { %1811 = vtanh.f32 %v277_v30 }
 0x116   :  { %1813 = vtanh.f32 %v280_v35 }
 0x117   :  { %1815 = vtanh.f32 %v282_v37 }
 0x118   :  { %1817 = vtanh.f32 %v285_v43 }
 0x119   :  { %1819 = vtanh.f32 %v287_v45 }
 0x11a   :  { %1821 = vtanh.f32 %v290_v50 }
 0x11b   :  { %v1812_v33 = vpop.eup %1811  ;;  %1823 = vtanh.f32 %v292_v52  ;;  %v436_v5 = vpop.f32.mrf.mxu1 }
 0x11c   :  { %v354_v34 = vpack.c.bf16 %v1812_v33, %v1810_v32  ;;  %v1814_v39 = vpop.eup %1813  ;;  %1825 = vtanh.f32 %v295_v58  ;;  %v437_v31 = vadd.f32 %v436_v5, %v2271_v28 }
 0x11d   :  { %v1816_v40 = vpop.eup %1815  ;;  %1827 = vtanh.f32 %v297_v60 }
 0x11e   :  { %475 = vmatmul.bf16.vlgmr.msra.gmra.mxu2 %v354_v34  ;;  %v355_v41 = vpack.c.bf16 %v1816_v40, %v1814_v39  ;;  %v1818_v47 = vpop.eup %1817  ;;  %1829 = vtanh.f32 %v300_v1  ;;  %v1746_v39 = vld [vmem:[%s2734_s4 + $0x38] sm:$0xff] }
 0x11f   :  { %v1820_v48 = vpop.eup %1819  ;;  %1831 = vtanh.f32 %v302_v4  ;;  %927 = vmatpush.bf16.msrb.mxu3 %v1746_v39 }
 0x120   :  { %v356_v49 = vpack.c.bf16 %v1820_v48, %v1818_v47  ;;  %v1822_v54 = vpop.eup %1821  ;;  %1833 = vtanh.f32 %v305_v10  ;;  %v1745_v47 = vld [vmem:[%s2734_s4 + $0x30] sm:$0xff] }
 0x121   :  { %v1824_v55 = vpop.eup %1823  ;;  %1835 = vtanh.f32 %v307_v12  ;;  %v1743_v12 = vld [vmem:[%s2734_s4 + $0x20] sm:$0xff] }
 0x122   :  { %v357_v57 = vpack.c.bf16 %v1824_v55, %v1822_v54  ;;  %v1826_v62 = vpop.eup %1825  ;;  %1837 = vtanh.f32 %v310_v21 }
 0x123   :  { %v1828_v63 = vpop.eup %1827  ;;  %v438_v13 = vpop.f32.mrf.mxu1  ;;  %1839 = vtanh.f32 %v312_v22  ;;  %928 = vmatpush.bf16.msrb.mxu3 %v1745_v47 }
 0x124   :  { %v358_v0 = vpack.c.bf16 %v1828_v63, %v1826_v62  ;;  %v1830_v6 = vpop.eup %1829  ;;  %v439_v30 = vadd.f32 %v438_v13, %v2271_v28 }
 0x125   :  { %v1832_v8 = vpop.eup %1831 }
 0x126   :  { %v359_v9 = vpack.c.bf16 %v1832_v8, %v1830_v6  ;;  %v1834_v15 = vpop.eup %1833  ;;  %1841 = vtanh.f32 %v439_v30 }
 0x127   :  { %v1836_v16 = vpop.eup %1835  ;;  %1843 = vtanh.f32 %v437_v31  ;;  %929 = vmatpush.bf16.msrb.mxu3 %v1744_v61 }
 0x128   :  { %v360_v19 = vpack.c.bf16 %v1836_v16, %v1834_v15  ;;  %v1838_v25 = vpop.eup %1837 }
 0x129   :  { %v1840_v26 = vpop.eup %1839 }
 0x12a   :  { %v361_v27 = vpack.c.bf16 %v1840_v26, %v1838_v25 }
 0x12b   :  { %v441_v17 = vpop.f32.mrf.mxu1  ;;  %930 = vmatpush.bf16.msrb.mxu3 %v1743_v12 }
 0x12c   :  { %v1842_v33 = vpop.eup %1841  ;;  %v442_v36 = vadd.f32 %v441_v17, %v2271_v28 }
 0x12d   :  { %v1844_v23 = vpop.eup %1843 }
 0x12e   :  { %480 = vmatmul.bf16.gmra.mxu2 %v355_v41  ;;  %v548_v34 = vpack.c.bf16 %v1842_v33, %v1844_v23 }
 0x133   :  { %v443_v24 = vpop.f32.mrf.mxu1 }
 0x134   :  { %v444_v35 = vadd.f32 %v443_v24, %v2271_v28 }
 0x136   :  { %1845 = vtanh.f32 %v444_v35 }
 0x137   :  { %1847 = vtanh.f32 %v442_v36  ;;  %v1741_v36 = vld [vmem:[%s2734_s4 + $0x10] sm:$0xff] }
 0x13b   :  { %v446_v29 = vpop.f32.mrf.mxu1 }
 0x13c   :  { %v1846_v41 = vpop.eup %1845  ;;  %v447_v50 = vadd.f32 %v446_v29, %v2271_v28  ;;  %v1742_v29 = vld [vmem:[%s2734_s4 + $0x18] sm:$0xff] }
 0x13d   :  { %v1848_v44 = vpop.eup %1847  ;;  %931 = vmatpush.bf16.msrb.mxu3 %v1742_v29 }
 0x13e   :  { %485 = vmatmul.bf16.gmra.mxu2 %v356_v49  ;;  %v549_v46 = vpack.c.bf16 %v1846_v41, %v1848_v44 }
 0x141   :  { %932 = vmatpush.bf16.msrb.mxu3 %v1741_v36 }
 0x143   :  { %v448_v32 = vpop.f32.mrf.mxu1 }
 0x144   :  { %v449_v48 = vadd.f32 %v448_v32, %v2271_v28 }
 0x14b   :  { %v451_v38 = vpop.f32.mrf.mxu1 }
 0x14c   :  { %v452_v1 = vadd.f32 %v451_v38, %v2271_v28 }
 0x14e   :  { %490 = vmatmul.bf16.gmra.mxu2 %v357_v57 }
 0x153   :  { %v453_v45 = vpop.f32.mrf.mxu1 }
 0x154   :  { %v454_v62 = vadd.f32 %v453_v45, %v2271_v28 }
 0x15b   :  { %v456_v54 = vpop.f32.mrf.mxu1 }
 0x15c   :  { %v457_v15 = vadd.f32 %v456_v54, %v2271_v28  ;;  %v1740_v54 = vld [vmem:[%s2734_s4 + $0x8] sm:$0xff] }
 0x15d   :  { %933 = vmatpush.bf16.msrb.mxu3 %v1740_v54 }
 0x15e   :  { %495 = vmatmul.bf16.gmra.mxu2 %v358_v0 }
 0x163   :  { %v458_v63 = vpop.f32.mrf.mxu1 }
 0x164   :  { %v459_v13 = vadd.f32 %v458_v63, %v2271_v28 }
 0x16b   :  { %v461_v8 = vpop.f32.mrf.mxu1 }
 0x16c   :  { %v462_v33 = vadd.f32 %v461_v8, %v2271_v28 }
 0x16e   :  { %500 = vmatmul.bf16.gmra.mxu2 %v359_v9 }
 0x17e   :  { %505 = vmatmul.bf16.gmra.mxu2 %v360_v19  ;;  %v463_v19 = vpop.f32.mrf.mxu1 }
 0x17f   :  { %v464_v31 = vadd.f32 %v463_v19, %v2271_v28 }
 0x186   :  { %v466_v30 = vpop.f32.mrf.mxu1 }
 0x18e   :  { %510 = vmatmul.bf16.gmra.mxu2 %v361_v27  ;;  %v468_v38 = vpop.f32.mrf.mxu1 }
 0x18f   :  { %v469_v44 = vadd.f32 %v468_v38, %v2271_v28 }
 0x19e   :  { %637 = vmatmul.bf16.vlgmr.msrb.gmra.mxu2 %v548_v34 }
 0x1a1   :  { %v476_v37 = vpop.f32.mrf.mxu2 }
 0x1a2   :  { %v477_v40 = vadd.f32 %v476_v37, %v2271_v28 }
 0x1a4   :  { %1849 = vtanh.f32 %v477_v40 }
 0x1a9   :  { %v478_v42 = vpop.f32.mrf.mxu2 }
 0x1aa   :  { %v479_v43 = vadd.f32 %v478_v42, %v2271_v28  ;;  %v2286_v49 = vpop.eup %1849 }
 0x1ac   :  { %1851 = vtanh.f32 %v479_v43 }
 0x1ad   :  { %1853 = vtanh.f32 %v449_v48 }
 0x1ae   :  { %642 = vmatmul.bf16.gmra.mxu2 %v549_v46  ;;  %1855 = vtanh.f32 %v447_v50  ;;  %v467_v46 = vadd.f32 %v466_v30, %v2271_v28  ;;  %v471_v50 = vpop.f32.mrf.mxu1 }
 0x1b1   :  { %v481_v51 = vpop.f32.mrf.mxu2 }
 0x1b2   :  { %v2289_v52 = vpop.eup %1851  ;;  %v482_v55 = vadd.f32 %v481_v51, %v2271_v28 }
 0x1b3   :  { %v556_v53 = vpack.c.bf16 %v2289_v52, %v2286_v49  ;;  %v1854_v56 = vpop.eup %1853  ;;  %v2063_v49 = vmov 0.0  }
 0x1b4   :  { %v1856_v59 = vpop.eup %1855  ;;  %1857 = vtanh.f32 %v482_v55 }
 0x1b5   :  { %v550_v60 = vpack.c.bf16 %v1854_v56, %v1856_v59 }
 0x1b9   :  { %v483_v57 = vpop.f32.mrf.mxu2 }
 0x1ba   :  { %v484_v58 = vadd.f32 %v483_v57, %v2271_v28  ;;  %v2299_v0 = vpop.eup %1857 }
 0x1bc   :  { %1859 = vtanh.f32 %v484_v58 }
 0x1bd   :  { %1861 = vtanh.f32 %v454_v62 }
 0x1be   :  { %647 = vmatmul.bf16.gmra.mxu2 %v550_v60  ;;  %1863 = vtanh.f32 %v452_v1  ;;  %v473_v60 = vpop.f32.mrf.mxu1  ;;  %v472_v1 = vadd.f32 %v471_v50, %v2271_v28 }
 0x1bf   :  { %v474_v62 = vadd.f32 %v473_v60, %v2271_v28 }
 0x1c1   :  { %v486_v2 = vpop.f32.mrf.mxu2 }
 0x1c2   :  { %v2302_v3 = vpop.eup %1859  ;;  %v487_v5 = vadd.f32 %v486_v2, %v2271_v28 }
 0x1c3   :  { %v557_v4 = vpack.c.bf16 %v2302_v3, %v2299_v0  ;;  %v1862_v6 = vpop.eup %1861 }
 0x1c4   :  { %v1864_v10 = vpop.eup %1863  ;;  %1865 = vtanh.f32 %v487_v5 }
 0x1c5   :  { %v551_v11 = vpack.c.bf16 %v1862_v6, %v1864_v10 }
 0x1c9   :  { %v488_v7 = vpop.f32.mrf.mxu2 }
 0x1ca   :  { %v489_v9 = vadd.f32 %v488_v7, %v2271_v28  ;;  %v2312_v14 = vpop.eup %1865  ;;  %v1739_v7 = vld [vmem:[%s2734_s4] sm:$0xff] }
 0x1cb   :  { %934 = vmatpush.bf16.msrb.mxu3 %v1739_v7  ;;  %v1750_v7 = vld [vmem:[#allocation2 + $0x18] sm:$0xff] }
 0x1cc   :  { %1867 = vtanh.f32 %v489_v9 }
 0x1cd   :  { %1869 = vtanh.f32 %v459_v13 }
 0x1ce   :  { %652 = vmatmul.bf16.gmra.mxu2 %v551_v11  ;;  %1871 = vtanh.f32 %v457_v15 }
 0x1d1   :  { %v491_v16 = vpop.f32.mrf.mxu2 }
 0x1d2   :  { %v2315_v17 = vpop.eup %1867  ;;  %v492_v21 = vadd.f32 %v491_v16, %v2271_v28 }
 0x1d3   :  { %v558_v18 = vpack.c.bf16 %v2315_v17, %v2312_v14  ;;  %v1870_v22 = vpop.eup %1869 }
 0x1d4   :  { %v1872_v26 = vpop.eup %1871  ;;  %1873 = vtanh.f32 %v492_v21 }
 0x1d5   :  { %v552_v27 = vpack.c.bf16 %v1870_v22, %v1872_v26  ;;  %v1754_v22 = vld [vmem:[#allocation2 + $0x38] sm:$0xff] }
 0x1d6   :  { %1129 = vmatpush.bf16.msrb.mxu0 %v1754_v22 }
 0x1d9   :  { %v493_v24 = vpop.f32.mrf.mxu2 }
 0x1da   :  { %v494_v25 = vadd.f32 %v493_v24, %v2271_v28  ;;  %v2325_v32 = vpop.eup %1873 }
 0x1dc   :  { %1875 = vtanh.f32 %v494_v25 }
 0x1dd   :  { %1877 = vtanh.f32 %v464_v31 }
 0x1de   :  { %657 = vmatmul.bf16.gmra.mxu2 %v552_v27  ;;  %1879 = vtanh.f32 %v462_v33  ;;  %v2375_v27 = vperm.slane %v2185_v20, 2  ;;  %v1753_v20 = vld [vmem:[#allocation2 + $0x30] sm:$0xff] }
 0x1df   :  { %1130 = vmatpush.bf16.msrb.mxu0 %v1753_v20  ;;  %v1748_v20 = vld [vmem:[#allocation2 + $0x8] sm:$0xff] }
 0x1e1   :  { %v496_v23 = vpop.f32.mrf.mxu2 }
 0x1e2   :  { %v2328_v34 = vpop.eup %1875  ;;  %v497_v37 = vadd.f32 %v496_v23, %v2271_v28 }
 0x1e3   :  { %v559_v35 = vpack.c.bf16 %v2328_v34, %v2325_v32  ;;  %v1878_v39 = vpop.eup %1877 }
 0x1e4   :  { %v1880_v42 = vpop.eup %1879  ;;  %1881 = vtanh.f32 %v497_v37 }
 0x1e5   :  { %v553_v43 = vpack.c.bf16 %v1878_v39, %v1880_v42 }
 0x1e9   :  { %v498_v40 = vpop.f32.mrf.mxu2 }
 0x1ea   :  { %v499_v41 = vadd.f32 %v498_v40, %v2271_v28  ;;  %v2338_v45 = vpop.eup %1881 }
 0x1ec   :  { %1883 = vtanh.f32 %v499_v41 }
 0x1ed   :  { %1885 = vtanh.f32 %v469_v44 }
 0x1ee   :  { %662 = vmatmul.bf16.gmra.mxu2 %v553_v43  ;;  %1887 = vtanh.f32 %v467_v46  ;;  %v1752_v46 = vld [vmem:[#allocation2 + $0x28] sm:$0xff] }
 0x1ef   :  { %1131 = vmatpush.bf16.msrb.mxu0 %v1752_v46 }
 0x1f1   :  { %v501_v47 = vpop.f32.mrf.mxu2 }
 0x1f2   :  { %v2341_v48 = vpop.eup %1883  ;;  %v502_v55 = vadd.f32 %v501_v47, %v2271_v28 }
 0x1f3   :  { %v560_v51 = vpack.c.bf16 %v2341_v48, %v2338_v45  ;;  %v1886_v56 = vpop.eup %1885 }
 0x1f4   :  { %v1888_v59 = vpop.eup %1887  ;;  %1889 = vtanh.f32 %v502_v55 }
 0x1f5   :  { %v554_v61 = vpack.c.bf16 %v1886_v56, %v1888_v59 }
 0x1f9   :  { %v503_v57 = vpop.f32.mrf.mxu2 }
 0x1fa   :  { %v504_v58 = vadd.f32 %v503_v57, %v2271_v28  ;;  %v2351_v63 = vpop.eup %1889 }
 0x1fc   :  { %1891 = vtanh.f32 %v504_v58  ;;  %v1751_v58 = vld [vmem:[#allocation2 + $0x20] sm:$0xff] }
 0x1fd   :  { %1893 = vtanh.f32 %v474_v62  ;;  %1132 = vmatpush.bf16.msrb.mxu0 %v1751_v58 }
 0x1fe   :  { %667 = vmatmul.bf16.gmra.mxu2 %v554_v61  ;;  %1895 = vtanh.f32 %v472_v1 }
 0x201   :  { %v506_v2 = vpop.f32.mrf.mxu2  ;;  %1133 = vmatpush.bf16.msrb.mxu0 %v1750_v7 }
 0x202   :  { %v2354_v5 = vpop.eup %1891  ;;  %v507_v8 = vadd.f32 %v506_v2, %v2271_v28 }
 0x203   :  { %v561_v6 = vpack.c.bf16 %v2354_v5, %v2351_v63  ;;  %v1894_v9 = vpop.eup %1893 }
 0x204   :  { %v1896_v12 = vpop.eup %1895  ;;  %1897 = vtanh.f32 %v507_v8 }
 0x205   :  { %v555_v13 = vpack.c.bf16 %v1894_v9, %v1896_v12 }
 0x209   :  { %v508_v10 = vpop.f32.mrf.mxu2 }
 0x20a   :  { %v509_v11 = vadd.f32 %v508_v10, %v2271_v28  ;;  %v2363_v15 = vpop.eup %1897 }
 0x20c   :  { %1899 = vtanh.f32 %v509_v11 }
 0x20e   :  { %672 = vmatmul.bf16.gmra.mxu2 %v555_v13 }
 0x211   :  { %v511_v16 = vpop.f32.mrf.mxu2 }
 0x212   :  { %v2365_v19 = vpop.eup %1899  ;;  %v512_v24 = vadd.f32 %v511_v16, %v2271_v28 }
 0x213   :  { %v562_v21 = vpack.c.bf16 %v2365_v19, %v2363_v15 }
 0x214   :  { %1901 = vtanh.f32 %v512_v24 }
 0x219   :  { %v513_v25 = vpop.f32.mrf.mxu2 }
 0x21a   :  { %v514_v26 = vadd.f32 %v513_v25, %v2271_v28  ;;  %v2377_v29 = vpop.eup %1901  ;;  %v1749_v25 = vld [vmem:[#allocation2 + $0x10] sm:$0xff] }
 0x21b   :  { %1134 = vmatpush.bf16.msrb.mxu0 %v1749_v25 }
 0x21c   :  { %1903 = vtanh.f32 %v514_v26 }
 0x21e   :  { %677 = vmatmul.bf16.gmra.mxu2 %v556_v53 }
 0x21f   :  { %1135 = vmatpush.bf16.msrb.mxu0 %v1748_v20 }
 0x221   :  { %v638_v30 = vpop.f32.mrf.mxu2 }
 0x222   :  { %v2379_v31 = vpop.eup %1903  ;;  %v639_v23 = vadd.f32 %v638_v30, %v2375_v27 }
 0x223   :  { %v563_v33 = vpack.c.bf16 %v2379_v31, %v2377_v29 }
 0x224   :  { %vm750_vm1 = vcmp.lt.f32.partialorder %v639_v23, -0.79467595  ;;  %vm718_vm2 = vcmp.gt.f32.partialorder %v639_v23, 0.79467595 }
 0x225   :  { %v782_v52 = vsel %vm750_vm1, -1.0, %v2063_v49 }
 0x226   :  { %v814_v37 = vsel %vm718_vm2, 1.0, %v782_v52 }
 0x229   :  { %v640_v28 = vpop.f32.mrf.mxu2 }
 0x22a   :  { %v641_v36 = vadd.f32 %v640_v28, %v2375_v27 }
 0x22c   :  { %vm719_vm3 = vcmp.gt.f32.partialorder %v641_v36, 0.79467595  ;;  %vm751_vm4 = vcmp.lt.f32.partialorder %v641_v36, -0.79467595 }
 0x22d   :  { %v783_v53 = vsel %vm751_vm4, -1.0, %v2063_v49 }
 0x22e   :  { %v815_v38 = vsel %vm719_vm3, 1.0, %v783_v53  ;;  %682 = vmatmul.bf16.gmra.mxu2 %v557_v4 }
 0x22f   :  { %v846_v39 = vpack.c.bf16 %v815_v38, %v814_v37 }
 0x231   :  { %v643_v40 = vpop.f32.mrf.mxu2  ;;  %935 = vmatmul.bf16.vlgmr.msrb.gmra.mxu3 %v846_v39 }
 0x232   :  { %v644_v41 = vadd.f32 %v643_v40, %v2375_v27 }
 0x234   :  { %vm752_vm5 = vcmp.lt.f32.partialorder %v644_v41, -0.79467595  ;;  %vm720_vm6 = vcmp.gt.f32.partialorder %v644_v41, 0.79467595 }
 0x235   :  { %v784_v44 = vsel %vm752_vm5, -1.0, %v2063_v49 }
 0x236   :  { %v816_v0 = vsel %vm720_vm6, 1.0, %v784_v44 }
 0x239   :  { %v645_v42 = vpop.f32.mrf.mxu2 }
 0x23a   :  { %v646_v43 = vadd.f32 %v645_v42, %v2375_v27  ;;  %v1747_v42 = vld [vmem:[#allocation2] sm:$0xff] }
 0x23b   :  { %1136 = vmatpush.bf16.msrb.mxu0 %v1747_v42 }
 0x23c   :  { %vm753_vm7 = vcmp.lt.f32.partialorder %v646_v43, -0.79467595  ;;  %vm721_vm8 = vcmp.gt.f32.partialorder %v646_v43, 0.79467595 }
 0x23d   :  { %v785_v47 = vsel %vm753_vm7, -1.0, %v2063_v49 }
 0x23e   :  { %687 = vmatmul.bf16.gmra.mxu2 %v558_v18  ;;  %v817_v3 = vsel %vm721_vm8, 1.0, %v785_v47 }
 0x23f   :  { %v847_v4 = vpack.c.bf16 %v817_v3, %v816_v0 }
 0x241   :  { %v648_v50 = vpop.f32.mrf.mxu2  ;;  %940 = vmatmul.bf16.gmra.mxu3 %v847_v4 }
 0x242   :  { %v649_v54 = vadd.f32 %v648_v50, %v2375_v27 }
 0x244   :  { %vm754_vm9 = vcmp.lt.f32.partialorder %v649_v54, -0.79467595  ;;  %vm722_vm10 = vcmp.gt.f32.partialorder %v649_v54, 0.79467595 }
 0x245   :  { %v786_v57 = vsel %vm754_vm9, -1.0, %v2063_v49 }
 0x246   :  { %v818_v17 = vsel %vm722_vm10, 1.0, %v786_v57 }
 0x249   :  { %v650_v55 = vpop.f32.mrf.mxu2 }
 0x24a   :  { %v651_v56 = vadd.f32 %v650_v55, %v2375_v27 }
 0x24c   :  { %vm755_vm11 = vcmp.lt.f32.partialorder %v651_v56, -0.79467595  ;;  %vm723_vm12 = vcmp.gt.f32.partialorder %v651_v56, 0.79467595 }
 0x24d   :  { %v787_v14 = vsel %vm755_vm11, -1.0, %v2063_v49 }
 0x24e   :  { %692 = vmatmul.bf16.gmra.mxu2 %v559_v35  ;;  %v819_v18 = vsel %vm723_vm12, 1.0, %v787_v14 }
 0x24f   :  { %v848_v59 = vpack.c.bf16 %v819_v18, %v818_v17 }
 0x251   :  { %v653_v60 = vpop.f32.mrf.mxu2  ;;  %945 = vmatmul.bf16.gmra.mxu3 %v848_v59  ;;  %v2444_v59 = vld [vmem:[%s2737_s7] sm:$0xff] }
 0x252   :  { %v654_v61 = vadd.f32 %v653_v60, %v2375_v27  ;;  %v2447_v60 = vperm.slane %v2444_v59, 3 }
 0x254   :  { %vm756_vm13 = vcmp.lt.f32.partialorder %v654_v61, -0.79467595  ;;  %vm724_vm14 = vcmp.gt.f32.partialorder %v654_v61, 0.79467595 }
 0x255   :  { %v788_v2 = vsel %vm756_vm13, -1.0, %v2063_v49 }
 0x256   :  { %v820_v34 = vsel %vm724_vm14, 1.0, %v788_v2 }
 0x259   :  { %v655_v62 = vpop.f32.mrf.mxu2 }
 0x25a   :  { %v656_v1 = vadd.f32 %v655_v62, %v2375_v27 }
 0x25c   :  { %vm757_vm15 = vcmp.lt.f32.partialorder %v656_v1, -0.79467595  ;;  %vm725_vm1 = vcmp.gt.f32.partialorder %v656_v1, 0.79467595 }
 0x25d   :  { %v789_v32 = vsel %vm757_vm15, -1.0, %v2063_v49 }
 0x25e   :  { %697 = vmatmul.bf16.gmra.mxu2 %v560_v51  ;;  %v821_v35 = vsel %vm725_vm1, 1.0, %v789_v32 }
 0x25f   :  { %v849_v8 = vpack.c.bf16 %v821_v35, %v820_v34 }
 0x261   :  { %v658_v9 = vpop.f32.mrf.mxu2  ;;  %950 = vmatmul.bf16.gmra.mxu3 %v849_v8 }
 0x262   :  { %v659_v10 = vadd.f32 %v658_v9, %v2375_v27  ;;  %v1762_v9 = vld [vmem:[%s2736_s6 + $0x38] sm:$0xff] }
 0x263   :  { %1331 = vmatpush.bf16.msrb.mxu1 %v1762_v9 }
 0x264   :  { %vm758_vm2 = vcmp.lt.f32.partialorder %v659_v10, -0.79467595  ;;  %vm726_vm3 = vcmp.gt.f32.partialorder %v659_v10, 0.79467595 }
 0x265   :  { %v790_v13 = vsel %vm758_vm2, -1.0, %v2063_v49 }
 0x266   :  { %v822_v48 = vsel %vm726_vm3, 1.0, %v790_v13 }
 0x269   :  { %v660_v11 = vpop.f32.mrf.mxu2 }
 0x26a   :  { %v661_v12 = vadd.f32 %v660_v11, %v2375_v27 }
 0x26c   :  { %vm727_vm4 = vcmp.gt.f32.partialorder %v661_v12, 0.79467595  ;;  %vm759_vm5 = vcmp.lt.f32.partialorder %v661_v12, -0.79467595 }
 0x26d   :  { %v791_v45 = vsel %vm759_vm5, -1.0, %v2063_v49 }
 0x26e   :  { %702 = vmatmul.bf16.gmra.mxu2 %v561_v6  ;;  %v823_v51 = vsel %vm727_vm4, 1.0, %v791_v45 }
 0x26f   :  { %v850_v16 = vpack.c.bf16 %v823_v51, %v822_v48 }
 0x271   :  { %v663_v22 = vpop.f32.mrf.mxu2  ;;  %955 = vmatmul.bf16.gmra.mxu3 %v850_v16 }
 0x272   :  { %v664_v24 = vadd.f32 %v663_v22, %v2375_v27 }
 0x274   :  { %vm760_vm6 = vcmp.lt.f32.partialorder %v664_v24, -0.79467595  ;;  %vm728_vm7 = vcmp.gt.f32.partialorder %v664_v24, 0.79467595 }
 0x275   :  { %v792_v23 = vsel %vm760_vm6, -1.0, %v2063_v49 }
 0x276   :  { %v824_v5 = vsel %vm728_vm7, 1.0, %v792_v23 }
 0x279   :  { %v665_v26 = vpop.f32.mrf.mxu2 }
 0x27a   :  { %v666_v30 = vadd.f32 %v665_v26, %v2375_v27 }
 0x27c   :  { %vm729_vm8 = vcmp.gt.f32.partialorder %v666_v30, 0.79467595  ;;  %vm761_vm9 = vcmp.lt.f32.partialorder %v666_v30, -0.79467595 }
 0x27d   :  { %v793_v63 = vsel %vm761_vm9, -1.0, %v2063_v49 }
 0x27e   :  { %v825_v6 = vsel %vm729_vm8, 1.0, %v793_v63  ;;  %707 = vmatmul.bf16.gmra.mxu2 %v562_v21 }
 0x27f   :  { %v851_v28 = vpack.c.bf16 %v825_v6, %v824_v5  ;;  %v1761_v6 = vld [vmem:[%s2736_s6 + $0x30] sm:$0xff] }
 0x280   :  { %1332 = vmatpush.bf16.msrb.mxu1 %v1761_v6 }
 0x281   :  { %v668_v36 = vpop.f32.mrf.mxu2  ;;  %960 = vmatmul.bf16.gmra.mxu3 %v851_v28 }
 0x282   :  { %v669_v52 = vadd.f32 %v668_v36, %v2375_v27 }
 0x284   :  { %vm762_vm10 = vcmp.lt.f32.partialorder %v669_v52, -0.79467595  ;;  %vm730_vm11 = vcmp.gt.f32.partialorder %v669_v52, 0.79467595 }
 0x285   :  { %v794_v38 = vsel %vm762_vm10, -1.0, %v2063_v49 }
 0x286   :  { %v826_v15 = vsel %vm730_vm11, 1.0, %v794_v38 }
 0x289   :  { %v670_v53 = vpop.f32.mrf.mxu2 }
 0x28a   :  { %v671_v37 = vadd.f32 %v670_v53, %v2375_v27 }
 0x28c   :  { %vm731_vm12 = vcmp.gt.f32.partialorder %v671_v37, 0.79467595  ;;  %vm763_vm13 = vcmp.lt.f32.partialorder %v671_v37, -0.79467595 }
 0x28d   :  { %v795_v39 = vsel %vm763_vm13, -1.0, %v2063_v49 }
 0x28e   :  { %v827_v19 = vsel %vm731_vm12, 1.0, %v795_v39  ;;  %712 = vmatmul.bf16.gmra.mxu2 %v563_v33 }
 0x28f   :  { %v852_v21 = vpack.c.bf16 %v827_v19, %v826_v15 }
 0x291   :  { %v673_v40 = vpop.f32.mrf.mxu2  ;;  %965 = vmatmul.bf16.gmra.mxu3 %v852_v21 }
 0x292   :  { %v674_v41 = vadd.f32 %v673_v40, %v2375_v27 }
 0x294   :  { %vm764_vm14 = vcmp.lt.f32.partialorder %v674_v41, -0.79467595  ;;  %vm732_vm15 = vcmp.gt.f32.partialorder %v674_v41, 0.79467595 }
 0x295   :  { %v796_v46 = vsel %vm764_vm14, -1.0, %v2063_v49 }
 0x296   :  { %v828_v29 = vsel %vm732_vm15, 1.0, %v796_v46  ;;  %v1760_v46 = vld [vmem:[%s2736_s6 + $0x28] sm:$0xff] }
 0x297   :  { %1333 = vmatpush.bf16.msrb.mxu1 %v1760_v46 }
 0x299   :  { %v675_v43 = vpop.f32.mrf.mxu2 }
 0x29a   :  { %v676_v44 = vadd.f32 %v675_v43, %v2375_v27 }
 0x29c   :  { %vm733_vm1 = vcmp.gt.f32.partialorder %v676_v44, 0.79467595  ;;  %vm765_vm2 = vcmp.lt.f32.partialorder %v676_v44, -0.79467595 }
 0x29d   :  { %v797_v47 = vsel %vm765_vm2, -1.0, %v2063_v49 }
 0x29e   :  { %v829_v31 = vsel %vm733_vm1, 1.0, %v797_v47 }
 0x29f   :  { %v853_v33 = vpack.c.bf16 %v829_v31, %v828_v29 }
 0x2a1   :  { %v678_v0 = vpop.f32.mrf.mxu2  ;;  %970 = vmatmul.bf16.gmra.mxu3 %v853_v33 }
 0x2a2   :  { %v679_v3 = vadd.f32 %v678_v0, %v2375_v27 }
 0x2a4   :  { %vm766_vm3 = vcmp.lt.f32.partialorder %v679_v3, -0.79467595  ;;  %vm734_vm4 = vcmp.gt.f32.partialorder %v679_v3, 0.79467595 }
 0x2a5   :  { %v798_v54 = vsel %vm766_vm3, -1.0, %v2063_v49 }
 0x2a6   :  { %v830_v56 = vsel %vm734_vm4, 1.0, %v798_v54 }
 0x2a9   :  { %v680_v4 = vpop.f32.mrf.mxu2 }
 0x2aa   :  { %v681_v50 = vadd.f32 %v680_v4, %v2375_v27 }
 0x2ac   :  { %vm735_vm5 = vcmp.gt.f32.partialorder %v681_v50, 0.79467595  ;;  %vm767_vm6 = vcmp.lt.f32.partialorder %v681_v50, -0.79467595 }
 0x2ad   :  { %v799_v55 = vsel %vm767_vm6, -1.0, %v2063_v49 }
 0x2ae   :  { %v831_v57 = vsel %vm735_vm5, 1.0, %v799_v55 }
 0x2af   :  { %v854_v14 = vpack.c.bf16 %v831_v57, %v830_v56 }
 0x2b1   :  { %v683_v17 = vpop.f32.mrf.mxu2  ;;  %975 = vmatmul.bf16.gmra.mxu3 %v854_v14 }
 0x2b2   :  { %v684_v18 = vadd.f32 %v683_v17, %v2375_v27 }
 0x2b4   :  { %v936_v58 = vpop.f32.mrf.mxu3  ;;  %vm768_vm7 = vcmp.lt.f32.partialorder %v684_v18, -0.79467595  ;;  %vm736_vm8 = vcmp.gt.f32.partialorder %v684_v18, 0.79467595 }
 0x2b5   :  { %v937_v62 = vadd.f32 %v936_v58, %v2447_v60  ;;  %v800_v2 = vsel %vm768_vm7, -1.0, %v2063_v49 }
 0x2b6   :  { %v832_v7 = vsel %vm736_vm8, 1.0, %v800_v2 }
 0x2b7   :  { %1905 = vtanh.f32 %v937_v62 }
 0x2b9   :  { %v685_v61 = vpop.f32.mrf.mxu2 }
 0x2ba   :  { %v686_v1 = vadd.f32 %v685_v61, %v2375_v27  ;;  %v1759_v61 = vld [vmem:[%s2736_s6 + $0x20] sm:$0xff] }
 0x2bb   :  { %1334 = vmatpush.bf16.msrb.mxu1 %v1759_v61 }
 0x2bc   :  { %vm737_vm9 = vcmp.gt.f32.partialorder %v686_v1, 0.79467595  ;;  %vm769_vm10 = vcmp.lt.f32.partialorder %v686_v1, -0.79467595  ;;  %v938_v32 = vpop.f32.mrf.mxu3 }
 0x2bd   :  { %v801_v34 = vsel %vm769_vm10, -1.0, %v2063_v49  ;;  %v939_v35 = vadd.f32 %v938_v32, %v2447_v60  ;;  %v1906_v12 = vpop.eup %1905 }
 0x2be   :  { %v833_v8 = vsel %vm737_vm9, 1.0, %v801_v34 }
 0x2bf   :  { %1907 = vtanh.f32 %v939_v35  ;;  %v855_v10 = vpack.c.bf16 %v833_v8, %v832_v7 }
 0x2c1   :  { %v688_v11 = vpop.f32.mrf.mxu2  ;;  %980 = vmatmul.bf16.gmra.mxu3 %v855_v10 }
 0x2c2   :  { %v689_v13 = vadd.f32 %v688_v11, %v2375_v27 }
 0x2c4   :  { %v941_v45 = vpop.f32.mrf.mxu3  ;;  %vm770_vm11 = vcmp.lt.f32.partialorder %v689_v13, -0.79467595  ;;  %vm738_vm12 = vcmp.gt.f32.partialorder %v689_v13, 0.79467595 }
 0x2c5   :  { %v1908_v48 = vpop.eup %1907  ;;  %v942_v22 = vadd.f32 %v941_v45, %v2447_v60  ;;  %v802_v25 = vsel %vm770_vm11, -1.0, %v2063_v49 }
 0x2c6   :  { %v1048_v51 = vpack.c.bf16 %v1908_v48, %v1906_v12  ;;  %v834_v63 = vsel %vm738_vm12, 1.0, %v802_v25 }
 0x2c7   :  { %1909 = vtanh.f32 %v942_v22 }
 0x2c8   :  { %1137 = vmatmul.bf16.vlgmr.msrb.gmra.mxu0 %v1048_v51 }
 0x2c9   :  { %v690_v16 = vpop.f32.mrf.mxu2 }
 0x2ca   :  { %v691_v24 = vadd.f32 %v690_v16, %v2375_v27  ;;  %v1758_v16 = vld [vmem:[%s2736_s6 + $0x18] sm:$0xff] }
 0x2cb   :  { %1335 = vmatpush.bf16.msrb.mxu1 %v1758_v16 }
 0x2cc   :  { %vm739_vm13 = vcmp.gt.f32.partialorder %v691_v24, 0.79467595  ;;  %vm771_vm14 = vcmp.lt.f32.partialorder %v691_v24, -0.79467595  ;;  %v943_v26 = vpop.f32.mrf.mxu3 }
 0x2cd   :  { %v803_v30 = vsel %vm771_vm14, -1.0, %v2063_v49  ;;  %v944_v23 = vadd.f32 %v943_v26, %v2447_v60  ;;  %v1910_v52 = vpop.eup %1909 }
 0x2ce   :  { %v835_v5 = vsel %vm739_vm13, 1.0, %v803_v30 }
 0x2cf   :  { %1911 = vtanh.f32 %v944_v23  ;;  %v856_v28 = vpack.c.bf16 %v835_v5, %v834_v63  ;;  %v1757_v5 = vld [vmem:[%s2736_s6 + $0x10] sm:$0xff] }
 0x2d0   :  { %1336 = vmatpush.bf16.msrb.mxu1 %v1757_v5 }
 0x2d1   :  { %v693_v36 = vpop.f32.mrf.mxu2  ;;  %985 = vmatmul.bf16.gmra.mxu3 %v856_v28 }
 0x2d2   :  { %v694_v20 = vadd.f32 %v693_v36, %v2375_v27 }
 0x2d4   :  { %v946_v53 = vpop.f32.mrf.mxu3  ;;  %vm772_vm15 = vcmp.lt.f32.partialorder %v694_v20, -0.79467595  ;;  %vm740_vm1 = vcmp.gt.f32.partialorder %v694_v20, 0.79467595 }
 0x2d5   :  { %v1912_v37 = vpop.eup %1911  ;;  %v947_v15 = vadd.f32 %v946_v53, %v2447_v60  ;;  %v804_v21 = vsel %vm772_vm15, -1.0, %v2063_v49 }
 0x2d6   :  { %v1049_v38 = vpack.c.bf16 %v1912_v37, %v1910_v52  ;;  %v836_v43 = vsel %vm740_vm1, 1.0, %v804_v21 }
 0x2d7   :  { %1913 = vtanh.f32 %v947_v15 }
 0x2d8   :  { %1142 = vmatmul.bf16.gmra.mxu0 %v1049_v38 }
 0x2d9   :  { %v695_v39 = vpop.f32.mrf.mxu2 }
 0x2da   :  { %v696_v19 = vadd.f32 %v695_v39, %v2375_v27 }
 0x2dc   :  { %vm741_vm2 = vcmp.gt.f32.partialorder %v696_v19, 0.79467595  ;;  %vm773_vm3 = vcmp.lt.f32.partialorder %v696_v19, -0.79467595  ;;  %v948_v40 = vpop.f32.mrf.mxu3 }
 0x2dd   :  { %v805_v41 = vsel %vm773_vm3, -1.0, %v2063_v49  ;;  %v949_v42 = vadd.f32 %v948_v40, %v2447_v60  ;;  %v1914_v31 = vpop.eup %1913 }
 0x2de   :  { %v837_v44 = vsel %vm741_vm2, 1.0, %v805_v41 }
 0x2df   :  { %1915 = vtanh.f32 %v949_v42  ;;  %v857_v47 = vpack.c.bf16 %v837_v44, %v836_v43  ;;  %v1756_v44 = vld [vmem:[%s2736_s6 + $0x8] sm:$0xff] }
 0x2e0   :  { %1337 = vmatpush.bf16.msrb.mxu1 %v1756_v44 }
 0x2e1   :  { %v698_v29 = vpop.f32.mrf.mxu2  ;;  %990 = vmatmul.bf16.gmra.mxu3 %v857_v47 }
 0x2e2   :  { %v699_v33 = vadd.f32 %v698_v29, %v2375_v27 }
 0x2e4   :  { %v951_v0 = vpop.f32.mrf.mxu3  ;;  %vm774_vm4 = vcmp.lt.f32.partialorder %v699_v33, -0.79467595  ;;  %vm742_vm5 = vcmp.gt.f32.partialorder %v699_v33, 0.79467595 }
 0x2e5   :  { %v1916_v3 = vpop.eup %1915  ;;  %v952_v54 = vadd.f32 %v951_v0, %v2447_v60  ;;  %v806_v56 = vsel %vm774_vm4, -1.0, %v2063_v49 }
 0x2e6   :  { %v1050_v4 = vpack.c.bf16 %v1916_v3, %v1914_v31  ;;  %v838_v18 = vsel %vm742_vm5, 1.0, %v806_v56 }
 0x2e7   :  { %1917 = vtanh.f32 %v952_v54 }
 0x2e8   :  { %1147 = vmatmul.bf16.gmra.mxu0 %v1050_v4 }
 0x2e9   :  { %v700_v50 = vpop.f32.mrf.mxu2 }
 0x2ea   :  { %v701_v55 = vadd.f32 %v700_v50, %v2375_v27 }
 0x2ec   :  { %vm743_vm6 = vcmp.gt.f32.partialorder %v701_v55, 0.79467595  ;;  %vm775_vm7 = vcmp.lt.f32.partialorder %v701_v55, -0.79467595  ;;  %v953_v57 = vpop.f32.mrf.mxu3 }
 0x2ed   :  { %v807_v14 = vsel %vm775_vm7, -1.0, %v2063_v49  ;;  %v954_v17 = vadd.f32 %v953_v57, %v2447_v60  ;;  %v1918_v2 = vpop.eup %1917 }
 0x2ee   :  { %v839_v58 = vsel %vm743_vm6, 1.0, %v807_v14  ;;  %v1755_v14 = vld [vmem:[%s2736_s6] sm:$0xff] }
 0x2ef   :  { %1919 = vtanh.f32 %v954_v17  ;;  %v858_v62 = vpack.c.bf16 %v839_v58, %v838_v18  ;;  %1338 = vmatpush.bf16.msrb.mxu1 %v1755_v14 }
 0x2f1   :  { %v703_v1 = vpop.f32.mrf.mxu2  ;;  %995 = vmatmul.bf16.gmra.mxu3 %v858_v62 }
 0x2f2   :  { %v704_v32 = vadd.f32 %v703_v1, %v2375_v27 }
 0x2f4   :  { %v956_v34 = vpop.f32.mrf.mxu3  ;;  %vm776_vm8 = vcmp.lt.f32.partialorder %v704_v32, -0.79467595  ;;  %vm744_vm9 = vcmp.gt.f32.partialorder %v704_v32, 0.79467595 }
 0x2f5   :  { %v1920_v35 = vpop.eup %1919  ;;  %v957_v9 = vadd.f32 %v956_v34, %v2447_v60  ;;  %v808_v11 = vsel %vm776_vm8, -1.0, %v2063_v49 }
 0x2f6   :  { %v1051_v7 = vpack.c.bf16 %v1920_v35, %v1918_v2  ;;  %v840_v48 = vsel %vm744_vm9, 1.0, %v808_v11 }
 0x2f7   :  { %1921 = vtanh.f32 %v957_v9 }
 0x2f8   :  { %1152 = vmatmul.bf16.gmra.mxu0 %v1051_v7 }
 0x2f9   :  { %v705_v8 = vpop.f32.mrf.mxu2 }
 0x2fa   :  { %v706_v10 = vadd.f32 %v705_v8, %v2375_v27 }
 0x2fc   :  { %vm745_vm10 = vcmp.gt.f32.partialorder %v706_v10, 0.79467595  ;;  %vm777_vm11 = vcmp.lt.f32.partialorder %v706_v10, -0.79467595  ;;  %v958_v12 = vpop.f32.mrf.mxu3  ;;  %v2519_v10 = vperm.slane %v2444_v59, 4 }
 0x2fd   :  { %v809_v13 = vsel %vm777_vm11, -1.0, %v2063_v49  ;;  %v959_v45 = vadd.f32 %v958_v12, %v2447_v60  ;;  %v1922_v25 = vpop.eup %1921 }
 0x2fe   :  { %v841_v51 = vsel %vm745_vm10, 1.0, %v809_v13 }
 0x2ff   :  { %1923 = vtanh.f32 %v959_v45  ;;  %v859_v22 = vpack.c.bf16 %v841_v51, %v840_v48 }
 0x301   :  { %v708_v24 = vpop.f32.mrf.mxu2  ;;  %1000 = vmatmul.bf16.gmra.mxu3 %v859_v22 }
 0x302   :  { %v709_v26 = vadd.f32 %v708_v24, %v2375_v27 }
 0x304   :  { %v961_v30 = vpop.f32.mrf.mxu3  ;;  %vm778_vm12 = vcmp.lt.f32.partialorder %v709_v26, -0.79467595  ;;  %vm746_vm13 = vcmp.gt.f32.partialorder %v709_v26, 0.79467595 }
 0x305   :  { %v1924_v23 = vpop.eup %1923  ;;  %v962_v28 = vadd.f32 %v961_v30, %v2447_v60  ;;  %v810_v52 = vsel %vm778_vm12, -1.0, %v2063_v49 }
 0x306   :  { %v1052_v63 = vpack.c.bf16 %v1924_v23, %v1922_v25  ;;  %v842_v38 = vsel %vm746_vm13, 1.0, %v810_v52 }
 0x307   :  { %1925 = vtanh.f32 %v962_v28 }
 0x308   :  { %1157 = vmatmul.bf16.gmra.mxu0 %v1052_v63 }
 0x309   :  { %v710_v6 = vpop.f32.mrf.mxu2 }
 0x30a   :  { %v711_v36 = vadd.f32 %v710_v6, %v2375_v27 }
 0x30c   :  { %vm747_vm14 = vcmp.gt.f32.partialorder %v711_v36, 0.79467595  ;;  %vm779_vm15 = vcmp.lt.f32.partialorder %v711_v36, -0.79467595  ;;  %v963_v20 = vpop.f32.mrf.mxu3 }
 0x30d   :  { %v811_v53 = vsel %vm779_vm15, -1.0, %v2063_v49  ;;  %v964_v37 = vadd.f32 %v963_v20, %v2447_v60  ;;  %v1926_v21 = vpop.eup %1925 }
 0x30e   :  { %v843_v39 = vsel %vm747_vm14, 1.0, %v811_v53 }
 0x30f   :  { %1927 = vtanh.f32 %v964_v37  ;;  %v860_v15 = vpack.c.bf16 %v843_v39, %v842_v38 }
 0x311   :  { %v713_v19 = vpop.f32.mrf.mxu2  ;;  %1005 = vmatmul.bf16.gmra.mxu3 %v860_v15 }
 0x312   :  { %v714_v40 = vadd.f32 %v713_v19, %v2375_v27 }
 0x314   :  { %v966_v41 = vpop.f32.mrf.mxu3  ;;  %vm780_vm1 = vcmp.lt.f32.partialorder %v714_v40, -0.79467595  ;;  %vm748_vm2 = vcmp.gt.f32.partialorder %v714_v40, 0.79467595 }
 0x315   :  { %v1928_v42 = vpop.eup %1927  ;;  %v967_v47 = vadd.f32 %v966_v41, %v2447_v60  ;;  %v812_v31 = vsel %vm780_vm1, -1.0, %v2063_v49 }
 0x316   :  { %v1053_v43 = vpack.c.bf16 %v1928_v42, %v1926_v21  ;;  %v844_v4 = vsel %vm748_vm2, 1.0, %v812_v31 }
 0x317   :  { %1929 = vtanh.f32 %v967_v47 }
 0x318   :  { %1162 = vmatmul.bf16.gmra.mxu0 %v1053_v43 }
 0x319   :  { %v715_v46 = vpop.f32.mrf.mxu2 }
 0x31a   :  { %v716_v29 = vadd.f32 %v715_v46, %v2375_v27 }
 0x31c   :  { %vm749_vm3 = vcmp.gt.f32.partialorder %v716_v29, 0.79467595  ;;  %vm781_vm4 = vcmp.lt.f32.partialorder %v716_v29, -0.79467595  ;;  %v968_v33 = vpop.f32.mrf.mxu3 }
 0x31d   :  { %v813_v0 = vsel %vm781_vm4, -1.0, %v2063_v49  ;;  %v969_v3 = vadd.f32 %v968_v33, %v2447_v60  ;;  %v1930_v55 = vpop.eup %1929 }
 0x31e   :  { %v845_v50 = vsel %vm749_vm3, 1.0, %v813_v0 }
 0x31f   :  { %1931 = vtanh.f32 %v969_v3  ;;  %v861_v54 = vpack.c.bf16 %v845_v50, %v844_v4 }
 0x321   :  { %1010 = vmatmul.bf16.gmra.mxu3 %v861_v54 }
 0x324   :  { %v971_v56 = vpop.f32.mrf.mxu3 }
 0x325   :  { %v1932_v27 = vpop.eup %1931  ;;  %v972_v17 = vadd.f32 %v971_v56, %v2447_v60 }
 0x326   :  { %v1054_v57 = vpack.c.bf16 %v1932_v27, %v1930_v55 }
 0x327   :  { %1933 = vtanh.f32 %v972_v17 }
 0x328   :  { %1167 = vmatmul.bf16.gmra.mxu0 %v1054_v57 }
 0x32c   :  { %v973_v49 = vpop.f32.mrf.mxu3 }
 0x32d   :  { %v974_v18 = vadd.f32 %v973_v49, %v2447_v60  ;;  %v1934_v58 = vpop.eup %1933 }
 0x32f   :  { %1935 = vtanh.f32 %v974_v18 }
 0x334   :  { %v976_v61 = vpop.f32.mrf.mxu3 }
 0x335   :  { %v1936_v62 = vpop.eup %1935  ;;  %v977_v2 = vadd.f32 %v976_v61, %v2447_v60 }
 0x336   :  { %v1055_v1 = vpack.c.bf16 %v1936_v62, %v1934_v58 }
 0x337   :  { %1937 = vtanh.f32 %v977_v2 }
 0x338   :  { %1172 = vmatmul.bf16.gmra.mxu0 %v1055_v1 }
 0x33c   :  { %v978_v32 = vpop.f32.mrf.mxu3 }
 0x33d   :  { %v979_v34 = vadd.f32 %v978_v32, %v2447_v60  ;;  %v1938_v35 = vpop.eup %1937 }
 0x33f   :  { %1939 = vtanh.f32 %v979_v34 }
 0x344   :  { %v981_v7 = vpop.f32.mrf.mxu3 }
 0x345   :  { %v1940_v8 = vpop.eup %1939  ;;  %v1138_v9 = vpop.f32.mrf.mxu0  ;;  %v982_v12 = vadd.f32 %v981_v7, %v2447_v60 }
 0x346   :  { %v1056_v11 = vpack.c.bf16 %v1940_v8, %v1938_v35  ;;  %v1139_v13 = vadd.f32 %v1138_v9, %v2519_v10 }
 0x347   :  { %1941 = vtanh.f32 %v982_v12 }
 0x348   :  { %1177 = vmatmul.bf16.gmra.mxu0 %v1056_v11  ;;  %1943 = vtanh.f32 %v1139_v13 }
 0x34c   :  { %v983_v45 = vpop.f32.mrf.mxu3 }
 0x34d   :  { %v984_v48 = vadd.f32 %v983_v45, %v2447_v60  ;;  %v1140_v51 = vpop.f32.mrf.mxu0  ;;  %v1942_v22 = vpop.eup %1941 }
 0x34e   :  { %v1141_v16 = vadd.f32 %v1140_v51, %v2519_v10  ;;  %v1944_v24 = vpop.eup %1943 }
 0x34f   :  { %1945 = vtanh.f32 %v984_v48 }
 0x350   :  { %1947 = vtanh.f32 %v1141_v16 }
 0x354   :  { %v986_v25 = vpop.f32.mrf.mxu3 }
 0x355   :  { %v1946_v26 = vpop.eup %1945  ;;  %v1143_v30 = vpop.f32.mrf.mxu0  ;;  %v987_v6 = vadd.f32 %v986_v25, %v2447_v60 }
 0x356   :  { %v1948_v23 = vpop.eup %1947  ;;  %v1057_v63 = vpack.c.bf16 %v1946_v26, %v1942_v22  ;;  %v1144_v28 = vadd.f32 %v1143_v30, %v2519_v10 }
 0x357   :  { %v1250_v5 = vpack.c.bf16 %v1948_v23, %v1944_v24  ;;  %1949 = vtanh.f32 %v987_v6 }
 0x358   :  { %1182 = vmatmul.bf16.gmra.mxu0 %v1057_v63  ;;  %1951 = vtanh.f32 %v1144_v28 }
 0x359   :  { %1339 = vmatmul.bf16.vlgmr.msrb.gmra.mxu1 %v1250_v5 }
 0x35c   :  { %v988_v36 = vpop.f32.mrf.mxu3 }
 0x35d   :  { %v989_v52 = vadd.f32 %v988_v36, %v2447_v60  ;;  %v1145_v20 = vpop.f32.mrf.mxu0  ;;  %v1950_v37 = vpop.eup %1949 }
 0x35e   :  { %v1146_v53 = vadd.f32 %v1145_v20, %v2519_v10  ;;  %v1952_v38 = vpop.eup %1951 }
 0x35f   :  { %1953 = vtanh.f32 %v989_v52 }
 0x360   :  { %1955 = vtanh.f32 %v1146_v53 }
 0x364   :  { %v991_v39 = vpop.f32.mrf.mxu3 }
 0x365   :  { %v1954_v15 = vpop.eup %1953  ;;  %v1148_v19 = vpop.f32.mrf.mxu0  ;;  %v992_v42 = vadd.f32 %v991_v39, %v2447_v60 }
 0x366   :  { %v1956_v21 = vpop.eup %1955  ;;  %v1058_v40 = vpack.c.bf16 %v1954_v15, %v1950_v37  ;;  %v1149_v43 = vadd.f32 %v1148_v19, %v2519_v10 }
 0x367   :  { %v1251_v41 = vpack.c.bf16 %v1956_v21, %v1952_v38  ;;  %1957 = vtanh.f32 %v992_v42 }
 0x368   :  { %1187 = vmatmul.bf16.gmra.mxu0 %v1058_v40  ;;  %1959 = vtanh.f32 %v1149_v43 }
 0x369   :  { %1344 = vmatmul.bf16.gmra.mxu1 %v1251_v41 }
 0x36c   :  { %v993_v44 = vpop.f32.mrf.mxu3 }
 0x36d   :  { %v994_v46 = vadd.f32 %v993_v44, %v2447_v60  ;;  %v1150_v47 = vpop.f32.mrf.mxu0  ;;  %v1958_v31 = vpop.eup %1957 }
 0x36e   :  { %v1151_v29 = vadd.f32 %v1150_v47, %v2519_v10  ;;  %v1960_v33 = vpop.eup %1959 }
 0x36f   :  { %1961 = vtanh.f32 %v994_v46 }
 0x370   :  { %1963 = vtanh.f32 %v1151_v29 }
 0x374   :  { %v996_v0 = vpop.f32.mrf.mxu3 }
 0x375   :  { %v1962_v3 = vpop.eup %1961  ;;  %v1153_v4 = vpop.f32.mrf.mxu0  ;;  %v997_v56 = vadd.f32 %v996_v0, %v2447_v60 }
 0x376   :  { %v1964_v50 = vpop.eup %1963  ;;  %v1059_v54 = vpack.c.bf16 %v1962_v3, %v1958_v31  ;;  %v1154_v27 = vadd.f32 %v1153_v4, %v2519_v10 }
 0x377   :  { %v1252_v55 = vpack.c.bf16 %v1964_v50, %v1960_v33  ;;  %1965 = vtanh.f32 %v997_v56 }
 0x378   :  { %1192 = vmatmul.bf16.gmra.mxu0 %v1059_v54  ;;  %1967 = vtanh.f32 %v1154_v27 }
 0x379   :  { %1349 = vmatmul.bf16.gmra.mxu1 %v1252_v55 }
 0x37c   :  { %v998_v57 = vpop.f32.mrf.mxu3 }
 0x37d   :  { %v999_v14 = vadd.f32 %v998_v57, %v2447_v60  ;;  %v1155_v17 = vpop.f32.mrf.mxu0  ;;  %v1966_v18 = vpop.eup %1965 }
 0x37e   :  { %v1156_v49 = vadd.f32 %v1155_v17, %v2519_v10  ;;  %v1968_v58 = vpop.eup %1967 }
 0x37f   :  { %1969 = vtanh.f32 %v999_v14  ;;  %v2554_v14 = vperm.slane %v2444_v59, 5 }
 0x380   :  { %1971 = vtanh.f32 %v1156_v49 }
 0x384   :  { %v1001_v61 = vpop.f32.mrf.mxu3 }
 0x385   :  { %v1970_v62 = vpop.eup %1969  ;;  %v1158_v1 = vpop.f32.mrf.mxu0  ;;  %v1002_v35 = vadd.f32 %v1001_v61, %v2447_v60 }
 0x386   :  { %v1972_v2 = vpop.eup %1971  ;;  %v1060_v32 = vpack.c.bf16 %v1970_v62, %v1966_v18  ;;  %v1159_v7 = vadd.f32 %v1158_v1, %v2519_v10 }
 0x387   :  { %v1253_v34 = vpack.c.bf16 %v1972_v2, %v1968_v58  ;;  %1973 = vtanh.f32 %v1002_v35 }
 0x388   :  { %1197 = vmatmul.bf16.gmra.mxu0 %v1060_v32  ;;  %1975 = vtanh.f32 %v1159_v7 }
 0x389   :  { %1354 = vmatmul.bf16.gmra.mxu1 %v1253_v34 }
 0x38c   :  { %v1003_v8 = vpop.f32.mrf.mxu3 }
 0x38d   :  { %v1004_v9 = vadd.f32 %v1003_v8, %v2447_v60  ;;  %v1160_v11 = vpop.f32.mrf.mxu0  ;;  %v1974_v13 = vpop.eup %1973 }
 0x38e   :  { %v1161_v12 = vadd.f32 %v1160_v11, %v2519_v10  ;;  %v1976_v45 = vpop.eup %1975 }
 0x38f   :  { %1977 = vtanh.f32 %v1004_v9 }
 0x390   :  { %1979 = vtanh.f32 %v1161_v12 }
 0x394   :  { %v1006_v48 = vpop.f32.mrf.mxu3 }
 0x395   :  { %v1978_v51 = vpop.eup %1977  ;;  %v1163_v16 = vpop.f32.mrf.mxu0  ;;  %v1007_v26 = vadd.f32 %v1006_v48, %v2447_v60 }
 0x396   :  { %v1980_v22 = vpop.eup %1979  ;;  %v1061_v24 = vpack.c.bf16 %v1978_v51, %v1974_v13  ;;  %v1164_v30 = vadd.f32 %v1163_v16, %v2519_v10 }
 0x397   :  { %v1254_v25 = vpack.c.bf16 %v1980_v22, %v1976_v45  ;;  %1981 = vtanh.f32 %v1007_v26 }
 0x398   :  { %1202 = vmatmul.bf16.gmra.mxu0 %v1061_v24  ;;  %1983 = vtanh.f32 %v1164_v30 }
 0x399   :  { %1359 = vmatmul.bf16.gmra.mxu1 %v1254_v25 }
 0x39c   :  { %v1008_v23 = vpop.f32.mrf.mxu3 }
 0x39d   :  { %v1009_v63 = vadd.f32 %v1008_v23, %v2447_v60  ;;  %v1165_v5 = vpop.f32.mrf.mxu0  ;;  %v1982_v28 = vpop.eup %1981 }
 0x39e   :  { %v1166_v6 = vadd.f32 %v1165_v5, %v2519_v10  ;;  %v1984_v36 = vpop.eup %1983 }
 0x39f   :  { %1985 = vtanh.f32 %v1009_v63 }
 0x3a0   :  { %1987 = vtanh.f32 %v1166_v6 }
 0x3a4   :  { %v1011_v52 = vpop.f32.mrf.mxu3 }
 0x3a5   :  { %v1986_v20 = vpop.eup %1985  ;;  %v1168_v53 = vpop.f32.mrf.mxu0  ;;  %v1012_v15 = vadd.f32 %v1011_v52, %v2447_v60 }
 0x3a6   :  { %v1988_v37 = vpop.eup %1987  ;;  %v1062_v38 = vpack.c.bf16 %v1986_v20, %v1982_v28  ;;  %v1169_v19 = vadd.f32 %v1168_v53, %v2519_v10 }
 0x3a7   :  { %v1255_v39 = vpack.c.bf16 %v1988_v37, %v1984_v36  ;;  %1989 = vtanh.f32 %v1012_v15 }
 0x3a8   :  { %1207 = vmatmul.bf16.gmra.mxu0 %v1062_v38  ;;  %1991 = vtanh.f32 %v1169_v19 }
 0x3a9   :  { %1364 = vmatmul.bf16.gmra.mxu1 %v1255_v39 }
 0x3ac   :  { %v1013_v21 = vpop.f32.mrf.mxu3 }
 0x3ad   :  { %v1014_v40 = vadd.f32 %v1013_v21, %v2447_v60  ;;  %v1170_v41 = vpop.f32.mrf.mxu0  ;;  %v1990_v43 = vpop.eup %1989 }
 0x3ae   :  { %v1171_v42 = vadd.f32 %v1170_v41, %v2519_v10  ;;  %v1992_v44 = vpop.eup %1991 }
 0x3af   :  { %1993 = vtanh.f32 %v1014_v40 }
 0x3b0   :  { %1995 = vtanh.f32 %v1171_v42 }
 0x3b5   :  { %v1994_v46 = vpop.eup %1993  ;;  %v1173_v47 = vpop.f32.mrf.mxu0 }
 0x3b6   :  { %v1996_v29 = vpop.eup %1995  ;;  %v1063_v31 = vpack.c.bf16 %v1994_v46, %v1990_v43  ;;  %v1174_v0 = vadd.f32 %v1173_v47, %v2519_v10 }
 0x3b7   :  { %v1256_v33 = vpack.c.bf16 %v1996_v29, %v1992_v44 }
 0x3b8   :  { %1212 = vmatmul.bf16.gmra.mxu0 %v1063_v31  ;;  %1997 = vtanh.f32 %v1174_v0 }
 0x3b9   :  { %1369 = vmatmul.bf16.gmra.mxu1 %v1256_v33 }
 0x3bd   :  { %v1175_v3 = vpop.f32.mrf.mxu0 }
 0x3be   :  { %v1176_v60 = vadd.f32 %v1175_v3, %v2519_v10  ;;  %v1998_v4 = vpop.eup %1997 }
 0x3c0   :  { %1999 = vtanh.f32 %v1176_v60 }
 0x3c5   :  { %v1178_v50 = vpop.f32.mrf.mxu0 }
 0x3c6   :  { %v2000_v54 = vpop.eup %1999  ;;  %v1179_v56 = vadd.f32 %v1178_v50, %v2519_v10 }
 0x3c7   :  { %v1257_v55 = vpack.c.bf16 %v2000_v54, %v1998_v4 }
 0x3c8   :  { %2001 = vtanh.f32 %v1179_v56 }
 0x3c9   :  { %1374 = vmatmul.bf16.gmra.mxu1 %v1257_v55 }
 0x3cd   :  { %v1180_v27 = vpop.f32.mrf.mxu0 }
 0x3ce   :  { %v1181_v57 = vadd.f32 %v1180_v27, %v2519_v10  ;;  %v2002_v17 = vpop.eup %2001 }
 0x3d0   :  { %2003 = vtanh.f32 %v1181_v57 }
 0x3d5   :  { %v1183_v49 = vpop.f32.mrf.mxu0 }
 0x3d6   :  { %v2004_v18 = vpop.eup %2003  ;;  %v1340_v58 = vpop.f32.mrf.mxu1  ;;  %v1184_v1 = vadd.f32 %v1183_v49, %v2519_v10 }
 0x3d7   :  { %v1341_v61 = vadd.f32 %v1340_v58, %v2554_v14  ;;  %v1258_v62 = vpack.c.bf16 %v2004_v18, %v2002_v17 }
 0x3d8   :  { %2005 = vtanh.f32 %v1184_v1 }
 0x3d9   :  { %1420 = vst.msk [vmem:[%s2738_s8] sm:$0xff] %vm176_vm0, %v1341_v61  ;;  %1379 = vmatmul.bf16.gmra.mxu1 %v1258_v62 }
 0x3dd   :  { %v1185_v2 = vpop.f32.mrf.mxu0 }
 0x3de   :  { %v1186_v32 = vadd.f32 %v1185_v2, %v2519_v10  ;;  %v1342_v59 = vpop.f32.mrf.mxu1  ;;  %v2006_v35 = vpop.eup %2005 }
 0x3df   :  { %v1343_v34 = vadd.f32 %v1342_v59, %v2554_v14 }
 0x3e0   :  { %2007 = vtanh.f32 %v1186_v32 }
 0x3e1   :  { %1421 = vst.msk [vmem:[%s2738_s8 + $0x8] sm:$0xff] %vm176_vm0, %v1343_v34 }
 0x3e5   :  { %v1188_v7 = vpop.f32.mrf.mxu0 }
 0x3e6   :  { %v2008_v8 = vpop.eup %2007  ;;  %v1345_v9 = vpop.f32.mrf.mxu1  ;;  %v1189_v13 = vadd.f32 %v1188_v7, %v2519_v10 }
 0x3e7   :  { %v1346_v11 = vadd.f32 %v1345_v9, %v2554_v14  ;;  %v1259_v12 = vpack.c.bf16 %v2008_v8, %v2006_v35 }
 0x3e8   :  { %2009 = vtanh.f32 %v1189_v13 }
 0x3e9   :  { %1422 = vst.msk [vmem:[%s2738_s8 + $0x10] sm:$0xff] %vm176_vm0, %v1346_v11  ;;  %1384 = vmatmul.bf16.gmra.mxu1 %v1259_v12 }
 0x3ed   :  { %v1190_v45 = vpop.f32.mrf.mxu0 }
 0x3ee   :  { %v1191_v48 = vadd.f32 %v1190_v45, %v2519_v10  ;;  %v1347_v51 = vpop.f32.mrf.mxu1  ;;  %v2010_v22 = vpop.eup %2009 }
 0x3ef   :  { %v1348_v16 = vadd.f32 %v1347_v51, %v2554_v14 }
 0x3f0   :  { %2011 = vtanh.f32 %v1191_v48 }
 0x3f1   :  { %1423 = vst.msk [vmem:[%s2738_s8 + $0x18] sm:$0xff] %vm176_vm0, %v1348_v16 }
 0x3f5   :  { %v1193_v24 = vpop.f32.mrf.mxu0 }
 0x3f6   :  { %v2012_v25 = vpop.eup %2011  ;;  %v1350_v26 = vpop.f32.mrf.mxu1  ;;  %v1194_v63 = vadd.f32 %v1193_v24, %v2519_v10 }
 0x3f7   :  { %v1351_v30 = vadd.f32 %v1350_v26, %v2554_v14  ;;  %v1260_v23 = vpack.c.bf16 %v2012_v25, %v2010_v22 }
 0x3f8   :  { %2013 = vtanh.f32 %v1194_v63 }
 0x3f9   :  { %1424 = vst.msk [vmem:[%s2738_s8 + $0x20] sm:$0xff] %vm176_vm0, %v1351_v30  ;;  %1389 = vmatmul.bf16.gmra.mxu1 %v1260_v23 }
 0x3fd   :  { %v1195_v5 = vpop.f32.mrf.mxu0 }
 0x3fe   :  { %v1196_v6 = vadd.f32 %v1195_v5, %v2519_v10  ;;  %v1352_v28 = vpop.f32.mrf.mxu1  ;;  %v2014_v52 = vpop.eup %2013 }
 0x3ff   :  { %v1353_v36 = vadd.f32 %v1352_v28, %v2554_v14 }
 0x400   :  { %2015 = vtanh.f32 %v1196_v6 }
 0x401   :  { %1425 = vst.msk [vmem:[%s2738_s8 + $0x28] sm:$0xff] %vm176_vm0, %v1353_v36 }
 0x405   :  { %v1198_v20 = vpop.f32.mrf.mxu0 }
 0x406   :  { %v2016_v53 = vpop.eup %2015  ;;  %v1355_v37 = vpop.f32.mrf.mxu1  ;;  %v1199_v15 = vadd.f32 %v1198_v20, %v2519_v10 }
 0x407   :  { %v1356_v38 = vadd.f32 %v1355_v37, %v2554_v14  ;;  %v1261_v39 = vpack.c.bf16 %v2016_v53, %v2014_v52 }
 0x408   :  { %2017 = vtanh.f32 %v1199_v15 }
 0x409   :  { %1426 = vst.msk [vmem:[%s2738_s8 + $0x30] sm:$0xff] %vm176_vm0, %v1356_v38  ;;  %1394 = vmatmul.bf16.gmra.mxu1 %v1261_v39 }
 0x40d   :  { %v1200_v19 = vpop.f32.mrf.mxu0 }
 0x40e   :  { %v1201_v21 = vadd.f32 %v1200_v19, %v2519_v10  ;;  %v1357_v40 = vpop.f32.mrf.mxu1  ;;  %v2018_v42 = vpop.eup %2017 }
 0x40f   :  { %v1358_v41 = vadd.f32 %v1357_v40, %v2554_v14 }
 0x410   :  { %2019 = vtanh.f32 %v1201_v21 }
 0x411   :  { %1427 = vst.msk [vmem:[%s2738_s8 + $0x38] sm:$0xff] %vm176_vm0, %v1358_v41 }
 0x415   :  { %v1203_v43 = vpop.f32.mrf.mxu0 }
 0x416   :  { %v2020_v44 = vpop.eup %2019  ;;  %v1360_v46 = vpop.f32.mrf.mxu1  ;;  %v1204_v31 = vadd.f32 %v1203_v43, %v2519_v10 }
 0x417   :  { %v1361_v47 = vadd.f32 %v1360_v46, %v2554_v14  ;;  %v1262_v29 = vpack.c.bf16 %v2020_v44, %v2018_v42 }
 0x418   :  { %2021 = vtanh.f32 %v1204_v31 }
 0x419   :  { %1428 = vst.msk [vmem:[%s2738_s8 + $0x40] sm:$0xff] %vm176_vm0, %v1361_v47  ;;  %1399 = vmatmul.bf16.gmra.mxu1 %v1262_v29 }
 0x41d   :  { %v1205_v33 = vpop.f32.mrf.mxu0 }
 0x41e   :  { %v1206_v0 = vadd.f32 %v1205_v33, %v2519_v10  ;;  %v1362_v3 = vpop.f32.mrf.mxu1  ;;  %v2022_v4 = vpop.eup %2021 }
 0x41f   :  { %v1363_v60 = vadd.f32 %v1362_v3, %v2554_v14 }
 0x420   :  { %2023 = vtanh.f32 %v1206_v0 }
 0x421   :  { %1429 = vst.msk [vmem:[%s2738_s8 + $0x48] sm:$0xff] %vm176_vm0, %v1363_v60 }
 0x425   :  { %v1208_v50 = vpop.f32.mrf.mxu0 }
 0x426   :  { %v2024_v54 = vpop.eup %2023  ;;  %v1365_v55 = vpop.f32.mrf.mxu1  ;;  %v1209_v57 = vadd.f32 %v1208_v50, %v2519_v10 }
 0x427   :  { %v1366_v56 = vadd.f32 %v1365_v55, %v2554_v14  ;;  %v1263_v27 = vpack.c.bf16 %v2024_v54, %v2022_v4 }
 0x428   :  { %2025 = vtanh.f32 %v1209_v57 }
 0x429   :  { %1430 = vst.msk [vmem:[%s2738_s8 + $0x50] sm:$0xff] %vm176_vm0, %v1366_v56  ;;  %1404 = vmatmul.bf16.gmra.mxu1 %v1263_v27 }
 0x42d   :  { %v1210_v17 = vpop.f32.mrf.mxu0 }
 0x42e   :  { %v1211_v49 = vadd.f32 %v1210_v17, %v2519_v10  ;;  %v1367_v18 = vpop.f32.mrf.mxu1  ;;  %v2026_v61 = vpop.eup %2025 }
 0x42f   :  { %v1368_v58 = vadd.f32 %v1367_v18, %v2554_v14 }
 0x430   :  { %2027 = vtanh.f32 %v1211_v49 }
 0x431   :  { %1431 = vst.msk [vmem:[%s2738_s8 + $0x58] sm:$0xff] %vm176_vm0, %v1368_v58 }
 0x435   :  { %v1213_v62 = vpop.f32.mrf.mxu0 }
 0x436   :  { %v2028_v1 = vpop.eup %2027  ;;  %v1370_v2 = vpop.f32.mrf.mxu1  ;;  %v1214_v34 = vadd.f32 %v1213_v62, %v2519_v10 }
 0x437   :  { %v1371_v32 = vadd.f32 %v1370_v2, %v2554_v14  ;;  %v1264_v59 = vpack.c.bf16 %v2028_v1, %v2026_v61 }
 0x438   :  { %2029 = vtanh.f32 %v1214_v34 }
 0x439   :  { %1432 = vst.msk [vmem:[%s2738_s8 + $0x60] sm:$0xff] %vm176_vm0, %v1371_v32  ;;  %1409 = vmatmul.bf16.gmra.mxu1 %v1264_v59 }
 0x43d   :  { %v1215_v35 = vpop.f32.mrf.mxu0 }
 0x43e   :  { %v1216_v7 = vadd.f32 %v1215_v35, %v2519_v10  ;;  %v1372_v8 = vpop.f32.mrf.mxu1  ;;  %v2030_v11 = vpop.eup %2029 }
 0x43f   :  { %v1373_v9 = vadd.f32 %v1372_v8, %v2554_v14 }
 0x440   :  { %2031 = vtanh.f32 %v1216_v7 }
 0x441   :  { %1433 = vst.msk [vmem:[%s2738_s8 + $0x68] sm:$0xff] %vm176_vm0, %v1373_v9 }
 0x446   :  { %v2032_v12 = vpop.eup %2031  ;;  %v1375_v13 = vpop.f32.mrf.mxu1 }
 0x447   :  { %v1376_v45 = vadd.f32 %v1375_v13, %v2554_v14  ;;  %v1265_v48 = vpack.c.bf16 %v2032_v12, %v2030_v11 }
 0x449   :  { %1434 = vst.msk [vmem:[%s2738_s8 + $0x70] sm:$0xff] %vm176_vm0, %v1376_v45  ;;  %1414 = vmatmul.bf16.gmra.mxu1 %v1265_v48 }
 0x44e   :  { %v1377_v10 = vpop.f32.mrf.mxu1 }
 0x44f   :  { %v1378_v51 = vadd.f32 %v1377_v10, %v2554_v14 }
 0x451   :  { %1435 = vst.msk [vmem:[%s2738_s8 + $0x78] sm:$0xff] %vm176_vm0, %v1378_v51 }
 0x456   :  { %v1380_v16 = vpop.f32.mrf.mxu1 }
 0x457   :  { %v1381_v22 = vadd.f32 %v1380_v16, %v2554_v14 }
 0x459   :  { %1436 = vst.msk [vmem:[%s2738_s8 + $0x80] sm:$0xff] %vm176_vm0, %v1381_v22 }
 0x45e   :  { %v1382_v24 = vpop.f32.mrf.mxu1 }
 0x45f   :  { %v1383_v25 = vadd.f32 %v1382_v24, %v2554_v14 }
 0x461   :  { %1437 = vst.msk [vmem:[%s2738_s8 + $0x88] sm:$0xff] %vm176_vm0, %v1383_v25 }
 0x466   :  { %v1385_v26 = vpop.f32.mrf.mxu1 }
 0x467   :  { %v1386_v30 = vadd.f32 %v1385_v26, %v2554_v14 }
 0x469   :  { %1438 = vst.msk [vmem:[%s2738_s8 + $0x90] sm:$0xff] %vm176_vm0, %v1386_v30 }
 0x46e   :  { %v1387_v23 = vpop.f32.mrf.mxu1 }
 0x46f   :  { %v1388_v63 = vadd.f32 %v1387_v23, %v2554_v14 }
 0x471   :  { %1439 = vst.msk [vmem:[%s2738_s8 + $0x98] sm:$0xff] %vm176_vm0, %v1388_v63 }
 0x476   :  { %v1390_v5 = vpop.f32.mrf.mxu1 }
 0x477   :  { %v1391_v6 = vadd.f32 %v1390_v5, %v2554_v14 }
 0x479   :  { %1440 = vst.msk [vmem:[%s2738_s8 + $0xa0] sm:$0xff] %vm176_vm0, %v1391_v6 }
 0x47e   :  { %v1392_v28 = vpop.f32.mrf.mxu1 }
 0x47f   :  { %v1393_v36 = vadd.f32 %v1392_v28, %v2554_v14 }
 0x481   :  { %1441 = vst.msk [vmem:[%s2738_s8 + $0xa8] sm:$0xff] %vm176_vm0, %v1393_v36 }
 0x486   :  { %v1395_v52 = vpop.f32.mrf.mxu1 }
 0x487   :  { %v1396_v20 = vadd.f32 %v1395_v52, %v2554_v14 }
 0x489   :  { %1442 = vst.msk [vmem:[%s2738_s8 + $0xb0] sm:$0xff] %vm176_vm0, %v1396_v20 }
 0x48e   :  { %v1397_v53 = vpop.f32.mrf.mxu1 }
 0x48f   :  { %v1398_v37 = vadd.f32 %v1397_v53, %v2554_v14 }
 0x491   :  { %1443 = vst.msk [vmem:[%s2738_s8 + $0xb8] sm:$0xff] %vm176_vm0, %v1398_v37 }
 0x496   :  { %v1400_v38 = vpop.f32.mrf.mxu1 }
 0x497   :  { %v1401_v39 = vadd.f32 %v1400_v38, %v2554_v14 }
 0x499   :  { %1444 = vst.msk [vmem:[%s2738_s8 + $0xc0] sm:$0xff] %vm176_vm0, %v1401_v39 }
 0x49e   :  { %v1402_v15 = vpop.f32.mrf.mxu1 }
 0x49f   :  { %v1403_v19 = vadd.f32 %v1402_v15, %v2554_v14 }
 0x4a1   :  { %1445 = vst.msk [vmem:[%s2738_s8 + $0xc8] sm:$0xff] %vm176_vm0, %v1403_v19 }
 0x4a6   :  { %v1405_v21 = vpop.f32.mrf.mxu1 }
 0x4a7   :  { %v1406_v40 = vadd.f32 %v1405_v21, %v2554_v14 }
 0x4a9   :  { %1446 = vst.msk [vmem:[%s2738_s8 + $0xd0] sm:$0xff] %vm176_vm0, %v1406_v40 }
 0x4ae   :  { %v1407_v41 = vpop.f32.mrf.mxu1 }
 0x4af   :  { %v1408_v42 = vadd.f32 %v1407_v41, %v2554_v14 }
 0x4b1   :  { %1447 = vst.msk [vmem:[%s2738_s8 + $0xd8] sm:$0xff] %vm176_vm0, %v1408_v42 }
 0x4b6   :  { %v1410_v43 = vpop.f32.mrf.mxu1 }
 0x4b7   :  { %v1411_v44 = vadd.f32 %v1410_v43, %v2554_v14 }
 0x4b9   :  { %1448 = vst.msk [vmem:[%s2738_s8 + $0xe0] sm:$0xff] %vm176_vm0, %v1411_v44 }
 0x4be   :  { %v1412_v46 = vpop.f32.mrf.mxu1 }
 0x4bf   :  { %v1413_v47 = vadd.f32 %v1412_v46, %v2554_v14 }
 0x4c1   :  { %1449 = vst.msk [vmem:[%s2738_s8 + $0xe8] sm:$0xff] %vm176_vm0, %v1413_v47 }
 0x4c6   :  { %v1415_v29 = vpop.f32.mrf.mxu1 }
 0x4c7   :  { %v1416_v31 = vadd.f32 %v1415_v29, %v2554_v14 }
 0x4c9   :  { %1450 = vst.msk [vmem:[%s2738_s8 + $0xf0] sm:$0xff] %vm176_vm0, %v1416_v31 }
 0x4ce   :  { %v1417_v33 = vpop.f32.mrf.mxu1 }
 0x4cf   :  { %v1418_v0 = vadd.f32 %v1417_v33, %v2554_v14 }
 0x4d1   :  { %1451 = vst.msk [vmem:[%s2738_s8 + $0xf8] sm:$0xff] %vm176_vm0, %v1418_v0 }
 0x4d2   :  { %1456 = vsyncpa [#allocation3], 1 }

</bundles_post_ra>
